<compile_context>
chip_gen: v6e
topology: v6e:2x2x1
jax: 0.10.0
libtpu: 0.0.40
codegen_flags: <defaults>
</compile_context>

<pallas_src>
import functools

import jax
import jax.numpy as jnp
from jax.experimental import pallas as pl
from jax.experimental.pallas import tpu as pltpu


IL_NAMES = ("il1_l", "il2_l", "il3_l", "il4_l", "il1_r", "il2_r", "il3_r", "il4_r")
# source s -> (left-branch module, right-branch module) sharing that source
_GROUPS = (("il1_l", "il1_r"), ("il2_l", "il3_r"), ("il3_l", "il2_r"), ("il4_l", "il4_r"))
# source s -> (layer1 index of left half, layer1 index of right half)
_PAIRS = ((0, 4), (1, 6), (2, 5), (3, 7))


def _apply_act(y, act):
    if act == "leakyrelu":
        return jnp.where(y >= 0.0, y, 0.01 * y)
    if act == "tanh":
        return jnp.tanh(y)
    if act == "sigmoid":
        return jax.nn.sigmoid(y)
    if act == "softmax":
        return jax.nn.softmax(y, axis=1)
    return jnp.maximum(y, 0.0)  # module falls back to ReLU for anything else


# ----------------------------------------------------------------------------
# Fused forward kernel (entire model, single pallas_call, grid=(batch_tiles, 4))
# ----------------------------------------------------------------------------
def _fused_kernel(*refs, plan, layout, act, has_il):
    if has_il:
        x_ref, wg_ref, pb_ref, o5_ref, ol_ref, l1_sc = refs
    else:
        x_ref, pb_ref, o5_ref, ol_ref, l1_sc = refs
        wg_ref = None

    src = pl.program_id(1)          # which of the 4 analogy inputs this step handles
    cdt = pb_ref.dtype              # MXU input dtype (bf16 by default)
    x = x_ref[0]                    # (TB, 784) in cdt
    nin = x.shape[1]

    # ---- per-source step: grouped first input-stage layer --------------------
    # Its (784+16, 2*h0) weight block (bias in row 784) is pipelined by Pallas,
    # so the DMA of source s+1's weights hides behind source s's matmul.
    if has_il:
        h0 = plan["il_dims"][0]
        w = wg_ref[0, :nin, :]                               # (784, 2*h0)
        b = wg_ref[0, nin:nin + 1, :].astype(jnp.float32)    # (1, 2*h0) bias row
        y = jnp.dot(x, w, preferred_element_type=jnp.float32) + b
        if act == "softmax":   # softmax(dim=1) must be applied per half
            y = jnp.concatenate(
                [_apply_act(y[:, :h0], act), _apply_act(y[:, h0:], act)], axis=1)
        else:                  # elementwise act: single VPU pass over the grouped tile
            y = _apply_act(y, act)
    else:
        y = jnp.concatenate([x, x], axis=1).astype(jnp.float32)
    l1_sc[src] = y                   # scratch persists across grid steps

    # ---- helpers: consume the packed small-parameter blob --------------------
    idx = [0]

    def take():
        went = layout[idx[0]]
        bent = layout[idx[0] + 1]
        idx[0] += 2
        return went, bent

    def wload(ent, r0=0, r1=None):
        off, rows, cols = ent
        r1 = rows if r1 is None else r1
        return pb_ref[off + r0:off + r1, :cols]

    def bload(ent):
        off, _, cols = ent
        return pb_ref[off:off + 1, :cols].astype(jnp.float32)

    def dense(xv, went, bent):
        yv = jnp.dot(xv.astype(cdt), wload(went),
                     preferred_element_type=jnp.float32) + bload(bent)
        return _apply_act(yv, act)

    def pair_dense(xa, xb, went, bent):
        # act(cat(xa, xb) @ W + b) == act(xa @ W[:da] + xb @ W[da:] + b); no concat.
        da = xa.shape[1]
        yv = jnp.dot(xa.astype(cdt), wload(went, 0, da),
                     preferred_element_type=jnp.float32)
        yv = yv + jnp.dot(xb.astype(cdt), wload(went, da, went[1]),
                          preferred_element_type=jnp.float32)
        return _apply_act(yv + bload(bent), act)

    # ---- last source step: rest of the network, entirely in VMEM/vregs -------
    @pl.when(src == pl.num_programs(1) - 1)
    def _finalize():
        w0 = plan["il_dims"][0] if has_il else nin
        branch = [None] * 8
        for g, (jl, jr) in enumerate(_PAIRS):
            grouped = l1_sc[g]                 # (TB, 2*w0)
            branch[jl] = grouped[:, :w0]
            branch[jr] = grouped[:, w0:]
        # deeper input-stage layers (if any), branch order j = 0..7
        for j in range(8):
            for _ in range(1, plan["il_depth"]):
                branch[j] = dense(branch[j], *take())

        # first stage
        layer2 = []
        for (ai, bi) in ((0, 1), (2, 3), (4, 5), (6, 7)):
            if plan["fl_depth"] > 0:
                yv = pair_dense(branch[ai], branch[bi], *take())
                for _ in range(1, plan["fl_depth"]):
                    yv = dense(yv, *take())
            else:
                yv = jnp.concatenate([branch[ai], branch[bi]], axis=1)
            layer2.append(yv)

        # second stage ('sl' weights shared by both halves, loaded once)
        if plan["sl_depth"] > 0:
            sl_ents = [take() for _ in range(plan["sl_depth"])]

            def run_sl(xa, xb):
                yv = pair_dense(xa, xb, *sl_ents[0])
                for ent in sl_ents[1:]:
                    yv = dense(yv, *ent)
                return yv

            l3a = run_sl(layer2[0], layer2[1])
            l3b = run_sl(layer2[2], layer2[3])
        else:
            l3a = jnp.concatenate([layer2[0], layer2[1]], axis=1)
            l3b = jnp.concatenate([layer2[2], layer2[3]], axis=1)

        # third stage
        if plan["tl_depth"] > 0:
            yv = pair_dense(l3a, l3b, *take())
            for _ in range(1, plan["tl_depth"]):
                yv = dense(yv, *take())
        else:
            yv = jnp.concatenate([l3a, l3b], axis=1)

        # sigmoid head
        went, bent = take()
        out5 = jax.nn.sigmoid(
            jnp.dot(yv.astype(cdt), wload(went),
                    preferred_element_type=jnp.float32) + bload(bent))

        o5_ref[...] = out5.astype(o5_ref.dtype)
        d1 = branch[0].shape[1]
        for j in range(4):
            ol_ref[:, j * d1:(j + 1) * d1] = branch[j].astype(ol_ref.dtype)


# ----------------------------------------------------------------------------
# Wrapper
# ----------------------------------------------------------------------------
def forward(packed, x1, x2, x3, x4, *, plan, layout, act="relu", batch_tile=None):
    """Fused forward.  `packed`/`layout` come from pack_params()."""
    B = x1.shape[0]
    pblob = packed["pblob"]
    wg = packed.get("wg", None)
    has_il = plan["il_depth"] > 0
    dt = pblob.dtype

    xs = jnp.stack([x.reshape(B, -1) for x in (x1, x2, x3, x4)], axis=0).astype(dt)
    nin = xs.shape[2]
    w0 = plan["il_dims"][0] if has_il else nin
    d1 = plan["il_dims"][-1] if has_il else nin

    TB = B if batch_tile is None else int(batch_tile)
    assert B % TB == 0 and (TB == B or TB % 8 == 0), "bad batch_tile"
    nb = B // TB

    grid = (nb, 4)
    in_specs = [pl.BlockSpec((1, TB, nin), lambda b, s: (s, b, 0))]
    args = [xs]
    if has_il:
        in_specs.append(pl.BlockSpec((1, wg.shape[1], wg.shape[2]),
                                     lambda b, s: (s, 0, 0)))
        args.append(wg)
    in_specs.append(pl.BlockSpec(pblob.shape, lambda b, s: (0, 0)))  # VMEM-resident
    args.append(pblob)

    out_shape = (jax.ShapeDtypeStruct((B, 1), jnp.float32),
                 jax.ShapeDtypeStruct((B, 4 * d1), jnp.float32))
    out_specs = (pl.BlockSpec((TB, 1), lambda b, s: (b, 0)),
                 pl.BlockSpec((TB, 4 * d1), lambda b, s: (b, 0)))

    itemsize = jnp.dtype(dt).itemsize
    need = (2 * TB * nin * itemsize                              # x block (double-buffered)
            + (2 * wg.shape[1] * wg.shape[2] * itemsize if has_il else 0)
            + pblob.size * itemsize                              # resident small blob
            + 2 * TB * (4 * d1 + 1) * 4                          # outputs
            + 4 * TB * 2 * w0 * 4)                               # scratch
    vmem_limit = int(min(48 << 20, max(32 << 20, 4 * need)))     # v7x-safe (<64 MiB phys)

    kernel = functools.partial(_fused_kernel, plan=plan, layout=layout,
                               act=act, has_il=has_il)
    out5, ol = pl.pallas_call(
        kernel,
        out_shape=out_shape,
        grid=grid,
        in_specs=in_specs,
        out_specs=out_specs,
        scratch_shapes=[pltpu.VMEM((4, TB, 2 * w0), jnp.float32)],
        compiler_params=pltpu.CompilerParams(
            dimension_semantics=("parallel", "arbitrary"),
            vmem_limit_bytes=vmem_limit),
    )(*args)
    return (out5,) + tuple(ol[:, j * d1:(j + 1) * d1] for j in range(4))


# ----------------------------------------------------------------------------
# Parameter construction (deterministic, PyTorch-default-like uniform init)
# ----------------------------------------------------------------------------
def _make_linear(key, d_in, d_out):
    kw, kb = jax.random.split(key)
    bound = 1.0 / jnp.sqrt(d_in)
    w = jax.random.uniform(kw, (d_in, d_out), jnp.float32, -bound, bound)
    b = jax.random.uniform(kb, (1, d_out), jnp.float32, -bound, bound)
    return (w, b)


def _make_mlp(key, d_in, sequence_arr):
    layers, prev = [], d_in
    for d_out in sequence_arr:
        key, sub = jax.random.split(key)
        layers.append(_make_linear(sub, prev, d_out))
        prev = d_out
    return layers


def make_params(seed, *, layer=784, input_layers=(), first_layers=(),
                second_layers=(), third_layers=(), using_shared_weight=False):
    assert not using_shared_weight  # TODO(synk): shared-weight branch not implemented
    key = jax.random.PRNGKey(seed)
    params = {}
    temp = layer
    if len(input_layers) > 0:
        for name in IL_NAMES:
            key, sub = jax.random.split(key)
            params[name] = _make_mlp(sub, layer, input_layers)
        temp = input_layers[-1]
    temp = temp * 2
    if len(first_layers) > 0:
        for name in ("fl1_l", "fl2_l", "fl1_r", "fl2_r"):
            key, sub = jax.random.split(key)
            params[name] = _make_mlp(sub, temp, first_layers)
        temp = first_layers[-1]
    temp = temp * 2
    if len(second_layers) > 0:
        key, sub = jax.random.split(key)
        params["sl"] = _make_mlp(sub, temp, second_layers)
        temp = second_layers[-1]
    temp = temp * 2
    if len(third_layers) > 0:
        key, sub = jax.random.split(key)
        params["tl"] = _make_mlp(sub, temp, third_layers)
        temp = third_layers[-1]
    key, sub = jax.random.split(key)
    params["fc_out"] = [_make_linear(sub, temp, 1)]
    return params


def build_plan(input_layers, first_layers, second_layers, third_layers):
    return dict(il_depth=len(input_layers), il_dims=tuple(input_layers),
                fl_depth=len(first_layers), fl_dims=tuple(first_layers),
                sl_depth=len(second_layers), sl_dims=tuple(second_layers),
                tl_depth=len(third_layers), tl_dims=tuple(third_layers))


def pack_params(params, plan, dtype=jnp.bfloat16):
    """Pack params into at most two device arrays + a static slice layout.

    packed["wg"]   : (4, 784+16, 2*h0) stacked grouped input-stage first-layer
                     weights (il1_l|il1_r, il2_l|il3_r, il3_l|il2_r, il4_l|il4_r);
                     row 784 of each block holds the grouped bias.
    packed["pblob"]: (R, W) row-packed blob of every other weight/bias, each entry
                     at a 16-row-aligned offset (clean bf16 sublane packing).
    layout         : static tuple of (row_offset, rows, cols) in the exact order
                     the kernel consumes them.
    Use dtype=jnp.bfloat16 (default) to halve weight DMA; f32 accumulation is kept
    in the kernel via preferred_element_type.
    """
    has_il = plan["il_depth"] > 0
    packed = {}
    if has_il:
        h0 = plan["il_dims"][0]
        stack = []
        for (nl, nr) in _GROUPS:
            (wl, bl) = params[nl][0]
            (wr, br) = params[nr][0]
            w = jnp.concatenate([wl, wr], axis=1)               # (784, 2*h0)
            b = jnp.concatenate([bl, br], axis=1)               # (1, 2*h0)
            pad = jnp.zeros((15, 2 * h0), jnp.float32)
            stack.append(jnp.concatenate([w, b, pad], axis=0))  # (800, 2*h0)
        packed["wg"] = jnp.stack(stack, axis=0).astype(dtype)

    entries = []

    def add(w, b):
        entries.append(jnp.asarray(w, jnp.float32))
        entries.append(jnp.asarray(b, jnp.float32))

    if plan["il_depth"] > 1:
        for name in IL_NAMES:
            for (w, b) in params[name][1:]:
                add(w, b)
    if plan["fl_depth"] > 0:
        for name in ("fl1_l", "fl2_l", "fl1_r", "fl2_r"):
            for (w, b) in params[name]:
                add(w, b)
    if plan["sl_depth"] > 0:
        for (w, b) in params["sl"]:
            add(w, b)
    if plan["tl_depth"] > 0:
        for (w, b) in params["tl"]:
            add(w, b)
    add(*params["fc_out"][0])

    ALIGN = 16  # bf16 packs 16 rows per sublane tile; also a multiple of 8 (f32)
    width = max(128, -(-max(int(a.shape[1]) for a in entries) // 128) * 128)
    layout, blocks, off = [], [], 0
    for a in entries:
        r, c = int(a.shape[0]), int(a.shape[1])
        rp = -(-r // ALIGN) * ALIGN
        layout.append((off, r, c))
        blocks.append(jnp.zeros((rp, width), jnp.float32).at[:r, :c].set(a))
        off += rp
    packed["pblob"] = jnp.concatenate(blocks, axis=0).astype(dtype)
    return packed, tuple(layout)


# ----------------------------------------------------------------------------
# Pure-JAX reference (correctness check)
# ----------------------------------------------------------------------------
def _ref_mlp(mlp, x, act):
    for (w, b) in mlp:
        x = _apply_act(x @ w + b, act)
    return x


def forward_ref(params, x1, x2, x3, x4, act="relu"):
    B = x1.shape[0]
    xs = [x.reshape(B, -1).astype(jnp.float32) for x in (x1, x2, x3, x4)]
    order = (0, 1, 2, 3, 0, 2, 1, 3)
    if "il1_l" in params:
        layer1 = [_ref_mlp(params[n], xs[i], act) for n, i in zip(IL_NAMES, order)]
    else:
        layer1 = [xs[i] for i in order]
    l2 = [jnp.concatenate([layer1[0], layer1[1]], 1),
          jnp.concatenate([layer1[2], layer1[3]], 1),
          jnp.concatenate([layer1[4], layer1[5]], 1),
          jnp.concatenate([layer1[6], layer1[7]], 1)]
    if "fl1_l" in params:
        fl_names = ("fl1_l", "fl2_l", "fl1_r", "fl2_r")
        l2 = [_ref_mlp(params[n], v, act) for n, v in zip(fl_names, l2)]
    l3 = [jnp.concatenate([l2[0], l2[1]], 1), jnp.concatenate([l2[2], l2[3]], 1)]
    if "sl" in params:
        l3 = [_ref_mlp(params["sl"], v, act) for v in l3]
    l4 = jnp.concatenate([l3[0], l3[1]], 1)
    if "tl" in params:
        l4 = _ref_mlp(params["tl"], l4, act)
    (w, b) = params["fc_out"][0]
    l5 = jax.nn.sigmoid(l4 @ w + b)
    return (l5, layer1[0], layer1[1], layer1[2], layer1[3])


# ----------------------------------------------------------------------------
if __name__ == "__main__":
    # Module hard-codes self.layer = 784 => inputs flatten to 784 features.
    B = 2
    input_layers = [128]
    first_layers = [64]
    second_layers = [64]
    third_layers = [32]
    act = "relu"

    params = make_params(
        seed=0, layer=784, input_layers=input_layers, first_layers=first_layers,
        second_layers=second_layers, third_layers=third_layers,
        using_shared_weight=False)
    plan = build_plan(input_layers, first_layers, second_layers, third_layers)

    key = jax.random.PRNGKey(0)
    k1, k2, k3, k4 = jax.random.split(key, 4)
    x1 = jax.random.normal(k1, (B, 1, 28, 28), jnp.float32)
    x2 = jax.random.normal(k2, (B, 1, 28, 28), jnp.float32)
    x3 = jax.random.normal(k3, (B, 1, 28, 28), jnp.float32)
    x4 = jax.random.normal(k4, (B, 1, 28, 28), jnp.float32)

    refs = forward_ref(params, x1, x2, x3, x4, act=act)

    # f32 packing: tight wiring check.  bf16 packing: the performance path
    # (half the weight DMA, native bf16 MXU); looser tolerance vs f32 reference.
    for dtype, tol in ((jnp.float32, 1e-4), (jnp.bfloat16, 5e-2)):
        packed, layout = pack_params(params, plan, dtype=dtype)
        fwd = jax.jit(functools.partial(forward, plan=plan, layout=layout, act=act))
        outs = jax.block_until_ready(fwd(packed, x1, x2, x3, x4))
        for o, r in zip(outs, refs):
            assert o.shape == r.shape and o.dtype == r.dtype
            err = float(jnp.max(jnp.abs(o - r)))
            assert err < tol, f"dtype={jnp.dtype(dtype).name} mismatch: {err}"

    print("KERNEL_OK")
</pallas_src>

<mosaic_0001>
module attributes {stable_mosaic.version = 11 : i64} {
  func.func @_fused_kernel(%arg0: i32, %arg1: i32, %arg2: memref<1x2x784xf32, #tpu.memory_space<vmem>>, %arg3: memref<1x800x256xf32, #tpu.memory_space<vmem>>, %arg4: memref<1424x128xf32, #tpu.memory_space<vmem>>, %arg5: memref<2x1xf32, #tpu.memory_space<vmem>>, %arg6: memref<2x512xf32, #tpu.memory_space<vmem>>, %arg7: memref<4x2x256xf32, #tpu.memory_space<vmem>>) attributes {dimension_semantics = [#tpu.dimension_semantics<parallel>, #tpu.dimension_semantics<arbitrary>], iteration_bounds = array<i64: 1, 4>, scalar_prefetch = 0 : i64, scratch_operands = 1 : i64, tpu.core_type = #tpu.core_type<tc>, window_params = [{transform_indices = @transform_0, window_bounds = array<i64: 1, 2, 784>}, {transform_indices = @transform_1, window_bounds = array<i64: 1, 800, 256>}, {pipeline_mode = #tpu.pipeline_mode<synchronous>, transform_indices = @transform_2, window_bounds = array<i64: 1424, 128>}, {transform_indices = @transform_3, window_bounds = array<i64: 2, 1>}, {transform_indices = @transform_4, window_bounds = array<i64: 2, 512>}]} {
    %c0 = arith.constant 0 : index
    %c0_0 = arith.constant 0 : index
    %c0_1 = arith.constant 0 : index
    %0 = vector.load %arg2[%c0, %c0_0, %c0_1] : memref<1x2x784xf32, #tpu.memory_space<vmem>>, vector<1x2x784xf32>
    %1 = vector.shape_cast %0 : vector<1x2x784xf32> to vector<2x784xf32>
    %c0_2 = arith.constant 0 : index
    %c0_3 = arith.constant 0 : index
    %c0_4 = arith.constant 0 : index
    %2 = vector.load %arg3[%c0_2, %c0_3, %c0_4] : memref<1x800x256xf32, #tpu.memory_space<vmem>>, vector<1x784x256xf32>
    %3 = vector.shape_cast %2 : vector<1x784x256xf32> to vector<784x256xf32>
    %c0_5 = arith.constant 0 : index
    %c784 = arith.constant 784 : index
    %c0_6 = arith.constant 0 : index
    %4 = vector.load %arg3[%c0_5, %c784, %c0_6] : memref<1x800x256xf32, #tpu.memory_space<vmem>>, vector<1x1x256xf32>
    %5 = vector.shape_cast %4 : vector<1x1x256xf32> to vector<1x256xf32>
    %cst = arith.constant dense<0.000000e+00> : vector<2x256xf32>
    %6 = tpu.matmul %1, %3, %cst {dimension_numbers = #tpu.dot_dimension_numbers<[1], [0], [0], [1], [0, 0, 1, 1], [], []>} : vector<2x784xf32>, vector<784x256xf32>, vector<2x256xf32> -> vector<2x256xf32>
    %7 = vector.broadcast %5 : vector<1x256xf32> to vector<2x256xf32>
    %8 = arith.addf %6, %7 : vector<2x256xf32>
    %cst_7 = arith.constant 0.000000e+00 : f32
    %9 = vector.broadcast %cst_7 : f32 to vector<2x256xf32>
    %10 = arith.maximumf %8, %9 : vector<2x256xf32>
    %11 = arith.index_cast %arg1 : i32 to index
    %c0_8 = arith.constant 0 : index
    %c0_9 = arith.constant 0 : index
    %12 = vector.load %arg7[%11, %c0_8, %c0_9] : memref<4x2x256xf32, #tpu.memory_space<vmem>>, vector<1x2x256xf32>
    %13 = vector.shape_cast %12 : vector<1x2x256xf32> to vector<2x256xf32>
    %14 = vector.shape_cast %10 : vector<2x256xf32> to vector<1x2x256xf32>
    tpu.vector_store %arg7[%11, %c0_8, %c0_9], %14 {strides = array<i32>} : memref<4x2x256xf32, #tpu.memory_space<vmem>>, vector<1x2x256xf32>,
    %c3_i32 = arith.constant 3 : i32
    %15 = arith.cmpi eq, %arg1, %c3_i32 : i32
    %16 = arith.extui %15 : i1 to i32
    %c0_i32 = arith.constant 0 : i32
    %17 = arith.cmpi ne, %16, %c0_i32 : i32
    scf.if %17 {
      %c0_10 = arith.constant 0 : index
      %c0_11 = arith.constant 0 : index
      %c0_12 = arith.constant 0 : index
      %18 = vector.load %arg7[%c0_10, %c0_11, %c0_12] : memref<4x2x256xf32, #tpu.memory_space<vmem>>, vector<1x2x256xf32>
      %19 = vector.shape_cast %18 : vector<1x2x256xf32> to vector<2x256xf32>
      %20 = vector.extract_strided_slice %19 {offsets = [0, 0], sizes = [2, 128], strides = [1, 1]} : vector<2x256xf32> to vector<2x128xf32>
      %21 = vector.extract_strided_slice %19 {offsets = [0, 128], sizes = [2, 128], strides = [1, 1]} : vector<2x256xf32> to vector<2x128xf32>
      %c1 = arith.constant 1 : index
      %c0_13 = arith.constant 0 : index
      %c0_14 = arith.constant 0 : index
      %22 = vector.load %arg7[%c1, %c0_13, %c0_14] : memref<4x2x256xf32, #tpu.memory_space<vmem>>, vector<1x2x256xf32>
      %23 = vector.shape_cast %22 : vector<1x2x256xf32> to vector<2x256xf32>
      %24 = vector.extract_strided_slice %23 {offsets = [0, 0], sizes = [2, 128], strides = [1, 1]} : vector<2x256xf32> to vector<2x128xf32>
      %25 = vector.extract_strided_slice %23 {offsets = [0, 128], sizes = [2, 128], strides = [1, 1]} : vector<2x256xf32> to vector<2x128xf32>
      %c2 = arith.constant 2 : index
      %c0_15 = arith.constant 0 : index
      %c0_16 = arith.constant 0 : index
      %26 = vector.load %arg7[%c2, %c0_15, %c0_16] : memref<4x2x256xf32, #tpu.memory_space<vmem>>, vector<1x2x256xf32>
      %27 = vector.shape_cast %26 : vector<1x2x256xf32> to vector<2x256xf32>
      %28 = vector.extract_strided_slice %27 {offsets = [0, 0], sizes = [2, 128], strides = [1, 1]} : vector<2x256xf32> to vector<2x128xf32>
      %29 = vector.extract_strided_slice %27 {offsets = [0, 128], sizes = [2, 128], strides = [1, 1]} : vector<2x256xf32> to vector<2x128xf32>
      %c3 = arith.constant 3 : index
      %c0_17 = arith.constant 0 : index
      %c0_18 = arith.constant 0 : index
      %30 = vector.load %arg7[%c3, %c0_17, %c0_18] : memref<4x2x256xf32, #tpu.memory_space<vmem>>, vector<1x2x256xf32>
      %31 = vector.shape_cast %30 : vector<1x2x256xf32> to vector<2x256xf32>
      %32 = vector.extract_strided_slice %31 {offsets = [0, 0], sizes = [2, 128], strides = [1, 1]} : vector<2x256xf32> to vector<2x128xf32>
      %33 = vector.extract_strided_slice %31 {offsets = [0, 128], sizes = [2, 128], strides = [1, 1]} : vector<2x256xf32> to vector<2x128xf32>
      %c0_19 = arith.constant 0 : index
      %c0_20 = arith.constant 0 : index
      %34 = vector.load %arg4[%c0_19, %c0_20] : memref<1424x128xf32, #tpu.memory_space<vmem>>, vector<128x64xf32>
      %cst_21 = arith.constant dense<0.000000e+00> : vector<2x64xf32>
      %35 = tpu.matmul %20, %34, %cst_21 {dimension_numbers = #tpu.dot_dimension_numbers<[1], [0], [0], [1], [0, 0, 1, 1], [], []>} : vector<2x128xf32>, vector<128x64xf32>, vector<2x64xf32> -> vector<2x64xf32>
      %c128 = arith.constant 128 : index
      %c0_22 = arith.constant 0 : index
      %36 = vector.load %arg4[%c128, %c0_22] : memref<1424x128xf32, #tpu.memory_space<vmem>>, vector<128x64xf32>
      %cst_23 = arith.constant dense<0.000000e+00> : vector<2x64xf32>
      %37 = tpu.matmul %24, %36, %cst_23 {dimension_numbers = #tpu.dot_dimension_numbers<[1], [0], [0], [1], [0, 0, 1, 1], [], []>} : vector<2x128xf32>, vector<128x64xf32>, vector<2x64xf32> -> vector<2x64xf32>
      %38 = arith.addf %35, %37 : vector<2x64xf32>
      %c256 = arith.constant 256 : index
      %c0_24 = arith.constant 0 : index
      %39 = vector.load %arg4[%c256, %c0_24] : memref<1424x128xf32, #tpu.memory_space<vmem>>, vector<1x64xf32>
      %40 = vector.broadcast %39 : vector<1x64xf32> to vector<2x64xf32>
      %41 = arith.addf %38, %40 : vector<2x64xf32>
      %cst_25 = arith.constant 0.000000e+00 : f32
      %42 = vector.broadcast %cst_25 : f32 to vector<2x64xf32>
      %43 = arith.maximumf %41, %42 : vector<2x64xf32>
      %c272 = arith.constant 272 : index
      %c0_26 = arith.constant 0 : index
      %44 = vector.load %arg4[%c272, %c0_26] : memref<1424x128xf32, #tpu.memory_space<vmem>>, vector<128x64xf32>
      %cst_27 = arith.constant dense<0.000000e+00> : vector<2x64xf32>
      %45 = tpu.matmul %28, %44, %cst_27 {dimension_numbers = #tpu.dot_dimension_numbers<[1], [0], [0], [1], [0, 0, 1, 1], [], []>} : vector<2x128xf32>, vector<128x64xf32>, vector<2x64xf32> -> vector<2x64xf32>
      %c400 = arith.constant 400 : index
      %c0_28 = arith.constant 0 : index
      %46 = vector.load %arg4[%c400, %c0_28] : memref<1424x128xf32, #tpu.memory_space<vmem>>, vector<128x64xf32>
      %cst_29 = arith.constant dense<0.000000e+00> : vector<2x64xf32>
      %47 = tpu.matmul %32, %46, %cst_29 {dimension_numbers = #tpu.dot_dimension_numbers<[1], [0], [0], [1], [0, 0, 1, 1], [], []>} : vector<2x128xf32>, vector<128x64xf32>, vector<2x64xf32> -> vector<2x64xf32>
      %48 = arith.addf %45, %47 : vector<2x64xf32>
      %c528 = arith.constant 528 : index
      %c0_30 = arith.constant 0 : index
      %49 = vector.load %arg4[%c528, %c0_30] : memref<1424x128xf32, #tpu.memory_space<vmem>>, vector<1x64xf32>
      %50 = vector.broadcast %49 : vector<1x64xf32> to vector<2x64xf32>
      %51 = arith.addf %48, %50 : vector<2x64xf32>
      %cst_31 = arith.constant 0.000000e+00 : f32
      %52 = vector.broadcast %cst_31 : f32 to vector<2x64xf32>
      %53 = arith.maximumf %51, %52 : vector<2x64xf32>
      %c544 = arith.constant 544 : index
      %c0_32 = arith.constant 0 : index
      %54 = vector.load %arg4[%c544, %c0_32] : memref<1424x128xf32, #tpu.memory_space<vmem>>, vector<128x64xf32>
      %cst_33 = arith.constant dense<0.000000e+00> : vector<2x64xf32>
      %55 = tpu.matmul %21, %54, %cst_33 {dimension_numbers = #tpu.dot_dimension_numbers<[1], [0], [0], [1], [0, 0, 1, 1], [], []>} : vector<2x128xf32>, vector<128x64xf32>, vector<2x64xf32> -> vector<2x64xf32>
      %c672 = arith.constant 672 : index
      %c0_34 = arith.constant 0 : index
      %56 = vector.load %arg4[%c672, %c0_34] : memref<1424x128xf32, #tpu.memory_space<vmem>>, vector<128x64xf32>
      %cst_35 = arith.constant dense<0.000000e+00> : vector<2x64xf32>
      %57 = tpu.matmul %29, %56, %cst_35 {dimension_numbers = #tpu.dot_dimension_numbers<[1], [0], [0], [1], [0, 0, 1, 1], [], []>} : vector<2x128xf32>, vector<128x64xf32>, vector<2x64xf32> -> vector<2x64xf32>
      %58 = arith.addf %55, %57 : vector<2x64xf32>
      %c800 = arith.constant 800 : index
      %c0_36 = arith.constant 0 : index
      %59 = vector.load %arg4[%c800, %c0_36] : memref<1424x128xf32, #tpu.memory_space<vmem>>, vector<1x64xf32>
      %60 = vector.broadcast %59 : vector<1x64xf32> to vector<2x64xf32>
      %61 = arith.addf %58, %60 : vector<2x64xf32>
      %cst_37 = arith.constant 0.000000e+00 : f32
      %62 = vector.broadcast %cst_37 : f32 to vector<2x64xf32>
      %63 = arith.maximumf %61, %62 : vector<2x64xf32>
      %c816 = arith.constant 816 : index
      %c0_38 = arith.constant 0 : index
      %64 = vector.load %arg4[%c816, %c0_38] : memref<1424x128xf32, #tpu.memory_space<vmem>>, vector<128x64xf32>
      %cst_39 = arith.constant dense<0.000000e+00> : vector<2x64xf32>
      %65 = tpu.matmul %25, %64, %cst_39 {dimension_numbers = #tpu.dot_dimension_numbers<[1], [0], [0], [1], [0, 0, 1, 1], [], []>} : vector<2x128xf32>, vector<128x64xf32>, vector<2x64xf32> -> vector<2x64xf32>
      %c944 = arith.constant 944 : index
      %c0_40 = arith.constant 0 : index
      %66 = vector.load %arg4[%c944, %c0_40] : memref<1424x128xf32, #tpu.memory_space<vmem>>, vector<128x64xf32>
      %cst_41 = arith.constant dense<0.000000e+00> : vector<2x64xf32>
      %67 = tpu.matmul %33, %66, %cst_41 {dimension_numbers = #tpu.dot_dimension_numbers<[1], [0], [0], [1], [0, 0, 1, 1], [], []>} : vector<2x128xf32>, vector<128x64xf32>, vector<2x64xf32> -> vector<2x64xf32>
      %68 = arith.addf %65, %67 : vector<2x64xf32>
      %c1072 = arith.constant 1072 : index
      %c0_42 = arith.constant 0 : index
      %69 = vector.load %arg4[%c1072, %c0_42] : memref<1424x128xf32, #tpu.memory_space<vmem>>, vector<1x64xf32>
      %70 = vector.broadcast %69 : vector<1x64xf32> to vector<2x64xf32>
      %71 = arith.addf %68, %70 : vector<2x64xf32>
      %cst_43 = arith.constant 0.000000e+00 : f32
      %72 = vector.broadcast %cst_43 : f32 to vector<2x64xf32>
      %73 = arith.maximumf %71, %72 : vector<2x64xf32>
      %c1088 = arith.constant 1088 : index
      %c0_44 = arith.constant 0 : index
      %74 = vector.load %arg4[%c1088, %c0_44] : memref<1424x128xf32, #tpu.memory_space<vmem>>, vector<64x64xf32>
      %cst_45 = arith.constant dense<0.000000e+00> : vector<2x64xf32>
      %75 = tpu.matmul %43, %74, %cst_45 {dimension_numbers = #tpu.dot_dimension_numbers<[1], [0], [0], [1], [0, 0, 1, 1], [], []>} : vector<2x64xf32>, vector<64x64xf32>, vector<2x64xf32> -> vector<2x64xf32>
      %c1152 = arith.constant 1152 : index
      %c0_46 = arith.constant 0 : index
      %76 = vector.load %arg4[%c1152, %c0_46] : memref<1424x128xf32, #tpu.memory_space<vmem>>, vector<64x64xf32>
      %cst_47 = arith.constant dense<0.000000e+00> : vector<2x64xf32>
      %77 = tpu.matmul %53, %76, %cst_47 {dimension_numbers = #tpu.dot_dimension_numbers<[1], [0], [0], [1], [0, 0, 1, 1], [], []>} : vector<2x64xf32>, vector<64x64xf32>, vector<2x64xf32> -> vector<2x64xf32>
      %78 = arith.addf %75, %77 : vector<2x64xf32>
      %c1216 = arith.constant 1216 : index
      %c0_48 = arith.constant 0 : index
      %79 = vector.load %arg4[%c1216, %c0_48] : memref<1424x128xf32, #tpu.memory_space<vmem>>, vector<1x64xf32>
      %80 = vector.broadcast %79 : vector<1x64xf32> to vector<2x64xf32>
      %81 = arith.addf %78, %80 : vector<2x64xf32>
      %cst_49 = arith.constant 0.000000e+00 : f32
      %82 = vector.broadcast %cst_49 : f32 to vector<2x64xf32>
      %83 = arith.maximumf %81, %82 : vector<2x64xf32>
      %c1088_50 = arith.constant 1088 : index
      %c0_51 = arith.constant 0 : index
      %84 = vector.load %arg4[%c1088_50, %c0_51] : memref<1424x128xf32, #tpu.memory_space<vmem>>, vector<64x64xf32>
      %cst_52 = arith.constant dense<0.000000e+00> : vector<2x64xf32>
      %85 = tpu.matmul %63, %84, %cst_52 {dimension_numbers = #tpu.dot_dimension_numbers<[1], [0], [0], [1], [0, 0, 1, 1], [], []>} : vector<2x64xf32>, vector<64x64xf32>, vector<2x64xf32> -> vector<2x64xf32>
      %c1152_53 = arith.constant 1152 : index
      %c0_54 = arith.constant 0 : index
      %86 = vector.load %arg4[%c1152_53, %c0_54] : memref<1424x128xf32, #tpu.memory_space<vmem>>, vector<64x64xf32>
      %cst_55 = arith.constant dense<0.000000e+00> : vector<2x64xf32>
      %87 = tpu.matmul %73, %86, %cst_55 {dimension_numbers = #tpu.dot_dimension_numbers<[1], [0], [0], [1], [0, 0, 1, 1], [], []>} : vector<2x64xf32>, vector<64x64xf32>, vector<2x64xf32> -> vector<2x64xf32>
      %88 = arith.addf %85, %87 : vector<2x64xf32>
      %c1216_56 = arith.constant 1216 : index
      %c0_57 = arith.constant 0 : index
      %89 = vector.load %arg4[%c1216_56, %c0_57] : memref<1424x128xf32, #tpu.memory_space<vmem>>, vector<1x64xf32>
      %90 = vector.broadcast %89 : vector<1x64xf32> to vector<2x64xf32>
      %91 = arith.addf %88, %90 : vector<2x64xf32>
      %cst_58 = arith.constant 0.000000e+00 : f32
      %92 = vector.broadcast %cst_58 : f32 to vector<2x64xf32>
      %93 = arith.maximumf %91, %92 : vector<2x64xf32>
      %c1232 = arith.constant 1232 : index
      %c0_59 = arith.constant 0 : index
      %94 = vector.load %arg4[%c1232, %c0_59] : memref<1424x128xf32, #tpu.memory_space<vmem>>, vector<64x32xf32>
      %cst_60 = arith.constant dense<0.000000e+00> : vector<2x32xf32>
      %95 = tpu.matmul %83, %94, %cst_60 {dimension_numbers = #tpu.dot_dimension_numbers<[1], [0], [0], [1], [0, 0, 1, 1], [], []>} : vector<2x64xf32>, vector<64x32xf32>, vector<2x32xf32> -> vector<2x32xf32>
      %c1296 = arith.constant 1296 : index
      %c0_61 = arith.constant 0 : index
      %96 = vector.load %arg4[%c1296, %c0_61] : memref<1424x128xf32, #tpu.memory_space<vmem>>, vector<64x32xf32>
      %cst_62 = arith.constant dense<0.000000e+00> : vector<2x32xf32>
      %97 = tpu.matmul %93, %96, %cst_62 {dimension_numbers = #tpu.dot_dimension_numbers<[1], [0], [0], [1], [0, 0, 1, 1], [], []>} : vector<2x64xf32>, vector<64x32xf32>, vector<2x32xf32> -> vector<2x32xf32>
      %98 = arith.addf %95, %97 : vector<2x32xf32>
      %c1360 = arith.constant 1360 : index
      %c0_63 = arith.constant 0 : index
      %99 = vector.load %arg4[%c1360, %c0_63] : memref<1424x128xf32, #tpu.memory_space<vmem>>, vector<1x32xf32>
      %100 = vector.broadcast %99 : vector<1x32xf32> to vector<2x32xf32>
      %101 = arith.addf %98, %100 : vector<2x32xf32>
      %cst_64 = arith.constant 0.000000e+00 : f32
      %102 = vector.broadcast %cst_64 : f32 to vector<2x32xf32>
      %103 = arith.maximumf %101, %102 : vector<2x32xf32>
      %c1376 = arith.constant 1376 : index
      %c0_65 = arith.constant 0 : index
      %104 = vector.load %arg4[%c1376, %c0_65] : memref<1424x128xf32, #tpu.memory_space<vmem>>, vector<32x1xf32>
      %cst_66 = arith.constant dense<0.000000e+00> : vector<2x1xf32>
      %105 = tpu.matmul %103, %104, %cst_66 {dimension_numbers = #tpu.dot_dimension_numbers<[1], [0], [0], [1], [0, 0, 1, 1], [], []>} : vector<2x32xf32>, vector<32x1xf32>, vector<2x1xf32> -> vector<2x1xf32>
      %c1408 = arith.constant 1408 : index
      %c0_67 = arith.constant 0 : index
      %106 = vector.load %arg4[%c1408, %c0_67] : memref<1424x128xf32, #tpu.memory_space<vmem>>, vector<1x1xf32>
      %107 = vector.broadcast %106 : vector<1x1xf32> to vector<2x1xf32>
      %108 = arith.addf %105, %107 : vector<2x1xf32>
      %109 = arith.negf %108 : vector<2x1xf32>
      %110 = math.exp %109 : vector<2x1xf32>
      %cst_68 = arith.constant 1.000000e+00 : f32
      %111 = vector.broadcast %cst_68 : f32 to vector<2x1xf32>
      %112 = arith.addf %111, %110 : vector<2x1xf32>
      %113 = arith.divf %111, %112 : vector<2x1xf32>
      %c0_69 = arith.constant 0 : index
      %c0_70 = arith.constant 0 : index
      %114 = vector.load %arg5[%c0_69, %c0_70] : memref<2x1xf32, #tpu.memory_space<vmem>>, vector<2x1xf32>
      tpu.vector_store %arg5[%c0_69, %c0_70], %113 {strides = array<i32>} : memref<2x1xf32, #tpu.memory_space<vmem>>, vector<2x1xf32>,
      %c0_71 = arith.constant 0 : index
      %c0_72 = arith.constant 0 : index
      %115 = vector.load %arg6[%c0_71, %c0_72] : memref<2x512xf32, #tpu.memory_space<vmem>>, vector<2x128xf32>
      tpu.vector_store %arg6[%c0_71, %c0_72], %20 {strides = array<i32>} : memref<2x512xf32, #tpu.memory_space<vmem>>, vector<2x128xf32>,
      %c0_73 = arith.constant 0 : index
      %c128_74 = arith.constant 128 : index
      %116 = vector.load %arg6[%c0_73, %c128_74] : memref<2x512xf32, #tpu.memory_space<vmem>>, vector<2x128xf32>
      tpu.vector_store %arg6[%c0_73, %c128_74], %24 {strides = array<i32>} : memref<2x512xf32, #tpu.memory_space<vmem>>, vector<2x128xf32>,
      %c0_75 = arith.constant 0 : index
      %c256_76 = arith.constant 256 : index
      %117 = vector.load %arg6[%c0_75, %c256_76] : memref<2x512xf32, #tpu.memory_space<vmem>>, vector<2x128xf32>
      tpu.vector_store %arg6[%c0_75, %c256_76], %28 {strides = array<i32>} : memref<2x512xf32, #tpu.memory_space<vmem>>, vector<2x128xf32>,
      %c0_77 = arith.constant 0 : index
      %c384 = arith.constant 384 : index
      %118 = vector.load %arg6[%c0_77, %c384] : memref<2x512xf32, #tpu.memory_space<vmem>>, vector<2x128xf32>
      tpu.vector_store %arg6[%c0_77, %c384], %32 {strides = array<i32>} : memref<2x512xf32, #tpu.memory_space<vmem>>, vector<2x128xf32>,
    } else {
    }
    return
  }
  func.func @transform_0(%arg0: i32, %arg1: i32) -> (i32, i32, i32) {
    %c0_i32 = arith.constant 0 : i32
    %c0_i32_0 = arith.constant 0 : i32
    return %arg1, %arg0, %c0_i32 : i32, i32, i32
  }
  func.func @transform_1(%arg0: i32, %arg1: i32) -> (i32, i32, i32) {
    %c0_i32 = arith.constant 0 : i32
    %c0_i32_0 = arith.constant 0 : i32
    %c0_i32_1 = arith.constant 0 : i32
    return %arg1, %c0_i32, %c0_i32_0 : i32, i32, i32
  }
  func.func @transform_2(%arg0: i32, %arg1: i32) -> (i32, i32) {
    %c0_i32 = arith.constant 0 : i32
    %c0_i32_0 = arith.constant 0 : i32
    %c0_i32_1 = arith.constant 0 : i32
    return %c0_i32, %c0_i32_0 : i32, i32
  }
  func.func @transform_3(%arg0: i32, %arg1: i32) -> (i32, i32) {
    %c0_i32 = arith.constant 0 : i32
    %c0_i32_0 = arith.constant 0 : i32
    return %arg0, %c0_i32 : i32, i32
  }
  func.func @transform_4(%arg0: i32, %arg1: i32) -> (i32, i32) {
    %c0_i32 = arith.constant 0 : i32
    %c0_i32_0 = arith.constant 0 : i32
    return %arg0, %c0_i32 : i32, i32
  }
}

</mosaic_0001>

<bundles_post_ra>
// kernel: forward.1
= control target key start
LH: loop header
LB: loop body
LE: loop exit
PB: predicated region body
PF: predicated region fallthrough
CT: control target
= control target key end

     0   :  { %10 = vsyncpa [#allocation4], 0  ;;  %s3825_s0 = inlined_call_operand.vmem [shape: f32[4,2,784], index: 0, kind: input, shape index: {}]   ;;  %s3826_s1 = inlined_call_operand.hbm [shape: f32[4,800,256], index: 1, kind: input, shape index: {}]   ;;  %s3827_s2 = inlined_call_operand.hbm [shape: f32[1424,128], index: 2, kind: input, shape index: {}]   ;;  %s3828_s3 = inlined_call_operand.vmem [shape: f32[2,1], index: 3, kind: output, shape index: {0}]   ;;  %s3829_s4 = inlined_call_operand.vmem [shape: f32[2,512], index: 4, kind: output, shape index: {1}]  }
   0x1   :  { %12 = vsyncpa [#allocation4 + $0x1], 0 }
   0x2   :  { %13 = vsyncpa [#allocation6], 0  ;;  %s3191_s15 = smov 0   ;;  %s3193_s16 = smov 0  }
   0x3   :  { %s3195_s17 = smov 0   ;;  %s3197_s18 = smov 0  }
   0x4   :  { %s3199_s19 = smov 0   ;;  %s3201_s20 = smov 0  }
   0x5 LB: > { %s2328_s21 = sadd.s32 4294967295, %s3154_s20   ;;  %p79_p0 = scmp.ne.s32.totalorder %s3138_s16, %s3134_s15  ;;  %s3154_s20 = sphi %s3201_s20, %s19_s20   ;;  %s3150_s19 = sphi %s3199_s19, %s3839_s19   ;;  %s3146_s18 = sphi %s3197_s18, %s3838_s18   ;;  %s3142_s17 = sphi %s3195_s17, %s3837_s17   ;;  %s3138_s16 = sphi %s3193_s16, %s3836_s16   ;;  %s3134_s15 = sphi %s3191_s15, %s3835_s15  }
   0x6   : > { %p3221_p1 = scmp.eq.s32.totalorder %s2328_s21, 0  ;;  %p2329_p2 = scmp.ge.s32.totalorder %s3154_s20, 1 }
   0x7   : > { %p163_p3 = scmp.lt.s32.totalorder %s3154_s20, 5  ;;  %s3156_s25 = smov [#allocation5]  }
   0x8   : > { %p3229_p4 = por %p3221_p1, %p79_p0  ;;  %s175_s26 = sshll.u32 %s3156_s25, 4  ;;  %s176_s26 = int_to_ptr.vmem [resolvable:$true] %s175_s26 }
   0x9   : > { %p3233_p5 = pnand %p2329_p2, %p163_p3  ;;  %s28_s28 = sadd.s32 1, %s3150_s19 }
   0xa   : > { %s3057_s29 = scalar_lea.vmem %s176_s26, 22784  ;;  %p3065_p12 = scmp.lt.s32.totalorder %s176_s26, %s176_s26 }
   0xb   : > { %p2972_p6 = pneg %p3233_p5  ;;  %p3058_p9 = scmp.ne.s32.totalorder %s176_s26, %s3057_s29 }
   0xc   : > { %p3066_p13 = scmp.lt.s32.totalorder %s3057_s29, %s3057_s29 }
   0xd   : > { %p3241_p7 = pnand %p2972_p6, %p3221_p1 }
   0xe   : > { %p3067_p0 = por %p3066_p13, %p3065_p12 }
   0xf   : > { %p3048_p8 = pneg %p3241_p7 }
  0x11   : > { %p3060_p10 = pnand %p3058_p9, %p3048_p8 }
  0x13   : > { %p3061_p11 = pneg %p3060_p10 }
  0x15   : > { %p3068_p2 = pnand %p3067_p0, %p3061_p11 }
  0x17   : > { %3071 = shalt.err (!%p3068_p2)
}
  0x18   : > { %s3157_s30 = smov 128   ;;  %s3158_s5 = smov 8  }
  0x19   : > { %2975 = dma.hbm_to_vmem [thread:$0]  (!%p3241_p7), %s3827_s2, 22784, %s176_s26, [#allocation6], %s3157_s30, %s3157_s30, %s3158_s5  }
  0x1a   : > { %p29_p3 = scmp.ge.s32.totalorder %s28_s28, 4  ;;  %s66_s8 = sadd.s32 1, %s3142_s17 }
  0x1b   : > { %p73_p6 = scmp.ne.s32.totalorder %s3142_s17, %s3138_s16  ;;  %p74_p8 = scmp.eq.s32.totalorder %s3154_s20, 0 }
  0x1c   : > { %s3841_s28 = smov (%p29_p3, %s28_s28), 0  ;;  %p2981_p10 = scmp.lt.s32.totalorder %s3154_s20, 4 }
  0x1d   : > { %p75_p9 = por %p74_p8, %p73_p6  ;;  %s63_s9 = ssub.s32 %s3150_s19, %s3841_s28 }
  0x1e   : > { %s201_s10 = sand.u32 1, %s3142_s17   ;;  %p64_p11 = scmp.eq.s32.totalorder %s63_s9, 0 }
  0x1f   : > { %s2962_s11 = smul.u32 1600, %s201_s10  ;;  %p3263_p12 = pnand %p2981_p10, %p75_p9 }
  0x20   : > { %s3268_s13 = scalar_select %p64_p11, %s3142_s17, %s66_s8  }
  0x21   : > { %s2963_s14 = smul.u32 25600, %s3150_s19  ;;  %s205_s15 = scalar_lea.vmem [#allocation3], %s2962_s11 }
  0x22   : > { %s212_s21 = sshll.u32 %s205_s15, 4  ;;  %s202_s29 = scalar_lea.sflag [#allocation4], %s201_s10  ;;  %s213_s21 = int_to_ptr.vmem [resolvable:$true] %s212_s21 }
  0x23   : > { %s211_s27 = scalar_lea.hbm %s3826_s1, %s2963_s14  ;;  %p3074_p7 = pneg %p3263_p12 }
  0x24   : > { %s3085_s30 = scalar_lea.vmem %s213_s21, 25600  ;;  %s3159_s5 = smov [#allocation3]  }
  0x25   : > { %p3086_p13 = scmp.ne.s32.totalorder %s213_s21, %s3085_s30  ;;  %s3090_s6 = sshll.u32 %s3159_s5, 4  ;;  %s3091_s6 = int_to_ptr.vmem [resolvable:$false] %s3090_s6 }
  0x26   : > { %s3092_s7 = scalar_lea.vmem %s3091_s6, 51200  ;;  %p3093_p3 = scmp.lt.s32.totalorder %s213_s21, %s3091_s6 }
  0x27   : > { %p3088_p0 = pnand %p3086_p13, %p3074_p7  ;;  %p3094_p6 = scmp.lt.s32.totalorder %s3092_s7, %s3085_s30 }
  0x29   : > { %p3089_p2 = pneg %p3088_p0  ;;  %p3095_p8 = por %p3094_p6, %p3093_p3 }
  0x2b   : > { %p3096_p9 = pnand %p3095_p8, %p3089_p2 }
  0x2d   : > { %3099 = shalt.err (!%p3096_p9)
}
  0x2e   : > { %s3160_s8 = smov 256   ;;  %s3161_s9 = smov 16  }
  0x2f   : > { %2979 = dma.hbm_to_vmem [thread:$0]  (!%p3263_p12), %s211_s27, 25600, %s213_s21, %s202_s29, %s3160_s8, %s3160_s8, %s3161_s9  }
  0x30   : > { %224 = sbr.rel (%p3233_p5) target bundleno = 1351 (0x547), region = 32  ;;  %s226_s10 = sand.u32 (!%p3233_p5), 1, %s3138_s16  }
  0x31   : > { %s2964_s11 = smul.u32 (!%p3233_p5), 1600, %s226_s10  ;;  %s227_s14 = scalar_lea.sflag (!%p3233_p5), [#allocation4], %s226_s10 }
  0x33   : > { %s3281_s15 = scalar_lea.vmem (!%p3233_p5), [#allocation3], %s2964_s11 }
  0x35   : > { %3125 = dma.done.wait (%p3229_p4), %s227_s14, 25600  }
  0x36   : > { %3127 = vsyncadd (%p3229_p4), %s227_s14, 4294941696 }
  0x37   : > { %3129 = dma.done.wait (%p3221_p1), [#allocation6], 22784  }
  0x38   : > { %3131 = vsyncadd (%p3221_p1), [#allocation6], 4294944512  ;;  %v323_v0 = vld [vmem:[%s3281_s15 + $0xf8] sm:$0xff]  ;;  %v322_v1 = vld [vmem:[%s3281_s15 + $0xf0] sm:$0xff]  ;;  %p272_p1 = scmp.lt.s32.totalorder %s3146_s18, 3  ;;  %vm542_vm0 = vcmask 130048  }
  0x39   : > { %v321_v2 = vld [vmem:[%s3281_s15 + $0xe8] sm:$0xff]  ;;  %545 = vmatprep.subr.mxu0 %v323_v0  ;;  %v387_v3 = vld [vmem:[%s3281_s15 + $0x2f8] sm:$0xff]  ;;  %v320_v4 = vld [vmem:[%s3281_s15 + $0xe0] sm:$0xff]  ;;  %s2361_s25 = sshll.u32 %s3146_s18, 2  ;;  %p2341_p4 = scmp.ne.s32.totalorder %s3146_s18, 3 }
  0x3a   : > { %v386_v5 = vld [vmem:[%s3281_s15 + $0x2f0] sm:$0xff]  ;;  %546 = vmatpush1.msra.mxu0 %v322_v1  ;;  %616 = vmatprep.subr.mxu1 %v387_v3  ;;  %v319_v6 = vld [vmem:[%s3281_s15 + $0xd8] sm:$0xff]  ;;  %v385_v7 = vld [vmem:[%s3281_s15 + $0x2e8] sm:$0xff]  ;;  %s3382_s22 = scalar_select %p272_p1, %s3146_s18, 3 }
  0x3b   : > { %547 = vmatprep.subr.mxu0 %v321_v2  ;;  %617 = vmatpush1.msra.mxu1 %v386_v5  ;;  %v318_v8 = vld [vmem:[%s3281_s15 + $0xd0] sm:$0xff]  ;;  %v384_v9 = vld [vmem:[%s3281_s15 + $0x2e0] sm:$0xff]  ;;  %v383_v10 = vld [vmem:[%s3281_s15 + $0x2d8] sm:$0xff]  ;;  %s844_s26 = scalar_lea.vmem [#allocation2], %s2361_s25 }
  0x3c   : > { %548 = vmatpush1.msra.mxu0 %v320_v4  ;;  %618 = vmatprep.subr.mxu1 %v385_v7  ;;  %v317_v11 = vld [vmem:[%s3281_s15 + $0xc8] sm:$0xff]  ;;  %v382_v12 = vld [vmem:[%s3281_s15 + $0x2d0] sm:$0xff]  ;;  %v316_v13 = vld [vmem:[%s3281_s15 + $0xc0] sm:$0xff]  ;;  %s2965_s23 = smul.u32 14, %s3382_s22 }
  0x3d   : > { %549 = vmatprep.subr.mxu0 %v319_v6  ;;  %619 = vmatpush1.msra.mxu1 %v384_v9  ;;  %v381_v14 = vld [vmem:[%s3281_s15 + $0x2c8] sm:$0xff]  ;;  %v315_v15 = vld [vmem:[%s3281_s15 + $0xb8] sm:$0xff]  ;;  %v380_v16 = vld [vmem:[%s3281_s15 + $0x2c0] sm:$0xff] }
  0x3e   : > { %550 = vmatpush1.msra.mxu0 %v318_v8  ;;  %620 = vmatprep.subr.mxu1 %v383_v10  ;;  %v314_v17 = vld [vmem:[%s3281_s15 + $0xb0] sm:$0xff]  ;;  %v379_v18 = vld [vmem:[%s3281_s15 + $0x2b8] sm:$0xff]  ;;  %v313_v19 = vld [vmem:[%s3281_s15 + $0xa8] sm:$0xff]  ;;  %s3406_s21 = scalar_lea.vmem %s3825_s0, %s2965_s23 }
  0x3f   : > { %551 = vmatprep.subr.mxu0 %v317_v11  ;;  %621 = vmatpush1.msra.mxu1 %v382_v12  ;;  %v378_v20 = vld [vmem:[%s3281_s15 + $0x2b0] sm:$0xff]  ;;  %v312_v21 = vld [vmem:[%s3281_s15 + $0xa0] sm:$0xff]  ;;  %v377_v22 = vld [vmem:[%s3281_s15 + $0x2a8] sm:$0xff] }
  0x40   : > { %552 = vmatpush1.msra.mxu0 %v316_v13  ;;  %622 = vmatprep.subr.mxu1 %v381_v14  ;;  %v311_v23 = vld [vmem:[%s3281_s15 + $0x98] sm:$0xff]  ;;  %v376_v24 = vld [vmem:[%s3281_s15 + $0x2a0] sm:$0xff]  ;;  %v310_v25 = vld [vmem:[%s3281_s15 + $0x90] sm:$0xff] }
  0x41   : > { %553 = vmatprep.subr.mxu0 %v315_v15  ;;  %623 = vmatpush1.msra.mxu1 %v380_v16  ;;  %v375_v26 = vld [vmem:[%s3281_s15 + $0x298] sm:$0xff]  ;;  %v309_v27 = vld [vmem:[%s3281_s15 + $0x88] sm:$0xff]  ;;  %v374_v28 = vld [vmem:[%s3281_s15 + $0x290] sm:$0xff] }
  0x42   : > { %554 = vmatpush1.msra.mxu0 %v314_v17  ;;  %624 = vmatprep.subr.mxu1 %v379_v18  ;;  %v308_v29 = vld [vmem:[%s3281_s15 + $0x80] sm:$0xff]  ;;  %v373_v30 = vld [vmem:[%s3281_s15 + $0x288] sm:$0xff]  ;;  %v307_v31 = vld [vmem:[%s3281_s15 + $0x78] sm:$0xff] }
  0x43   : > { %555 = vmatprep.subr.mxu0 %v313_v19  ;;  %625 = vmatpush1.msra.mxu1 %v378_v20  ;;  %v372_v32 = vld [vmem:[%s3281_s15 + $0x280] sm:$0xff]  ;;  %v306_v33 = vld [vmem:[%s3281_s15 + $0x70] sm:$0xff]  ;;  %v371_v34 = vld [vmem:[%s3281_s15 + $0x278] sm:$0xff] }
  0x44   : > { %556 = vmatpush1.msra.mxu0 %v312_v21  ;;  %626 = vmatprep.subr.mxu1 %v377_v22  ;;  %v305_v35 = vld [vmem:[%s3281_s15 + $0x68] sm:$0xff]  ;;  %v370_v36 = vld [vmem:[%s3281_s15 + $0x270] sm:$0xff]  ;;  %v304_v37 = vld [vmem:[%s3281_s15 + $0x60] sm:$0xff] }
  0x45   : > { %557 = vmatprep.subr.mxu0 %v311_v23  ;;  %627 = vmatpush1.msra.mxu1 %v376_v24  ;;  %v369_v38 = vld [vmem:[%s3281_s15 + $0x268] sm:$0xff]  ;;  %v303_v39 = vld [vmem:[%s3281_s15 + $0x58] sm:$0xff]  ;;  %v368_v40 = vld [vmem:[%s3281_s15 + $0x260] sm:$0xff] }
  0x46   : > { %558 = vmatpush1.msra.mxu0 %v310_v25  ;;  %628 = vmatprep.subr.mxu1 %v375_v26  ;;  %v302_v41 = vld [vmem:[%s3281_s15 + $0x50] sm:$0xff]  ;;  %v367_v42 = vld [vmem:[%s3281_s15 + $0x258] sm:$0xff]  ;;  %v301_v43 = vld [vmem:[%s3281_s15 + $0x48] sm:$0xff] }
  0x47   : > { %559 = vmatprep.subr.mxu0 %v309_v27  ;;  %629 = vmatpush1.msra.mxu1 %v374_v28  ;;  %v366_v44 = vld [vmem:[%s3281_s15 + $0x250] sm:$0xff]  ;;  %v300_v45 = vld [vmem:[%s3281_s15 + $0x40] sm:$0xff]  ;;  %v365_v46 = vld [vmem:[%s3281_s15 + $0x248] sm:$0xff]  ;;  %v491_v27 = vlaneseq  ;;  %v3162_v28 = vmov 1983009808  }
  0x48   : > { %560 = vmatpush1.msra.mxu0 %v308_v29  ;;  %630 = vmatprep.subr.mxu1 %v373_v30  ;;  %v299_v47 = vld [vmem:[%s3281_s15 + $0x38] sm:$0xff]  ;;  %v364_v48 = vld [vmem:[%s3281_s15 + $0x240] sm:$0xff]  ;;  %v298_v49 = vld [vmem:[%s3281_s15 + $0x30] sm:$0xff]  ;;  %v505_v29 = vunpack.c.l.s4 %v3162_v28 }
  0x49   : > { %561 = vmatprep.subr.mxu0 %v307_v31  ;;  %631 = vmatpush1.msra.mxu1 %v372_v32  ;;  %v363_v50 = vld [vmem:[%s3281_s15 + $0x238] sm:$0xff]  ;;  %v297_v51 = vld [vmem:[%s3281_s15 + $0x28] sm:$0xff]  ;;  %v362_v52 = vld [vmem:[%s3281_s15 + $0x230] sm:$0xff] }
  0x4a   : > { %562 = vmatpush1.msra.mxu0 %v306_v33  ;;  %632 = vmatprep.subr.mxu1 %v371_v34  ;;  %v296_v53 = vld [vmem:[%s3281_s15 + $0x20] sm:$0xff]  ;;  %v361_v54 = vld [vmem:[%s3281_s15 + $0x228] sm:$0xff]  ;;  %v295_v55 = vld [vmem:[%s3281_s15 + $0x18] sm:$0xff] }
  0x4b   : > { %563 = vmatprep.subr.mxu0 %v305_v35  ;;  %633 = vmatpush1.msra.mxu1 %v370_v36  ;;  %v360_v56 = vld [vmem:[%s3281_s15 + $0x220] sm:$0xff]  ;;  %v294_v57 = vld [vmem:[%s3281_s15 + $0x10] sm:$0xff]  ;;  %v359_v58 = vld [vmem:[%s3281_s15 + $0x218] sm:$0xff] }
  0x4c   : > { %564 = vmatpush1.msra.mxu0 %v304_v37  ;;  %634 = vmatprep.subr.mxu1 %v369_v38  ;;  %v293_v59 = vld [vmem:[%s3281_s15 + $0x8] sm:$0xff]  ;;  %v358_v60 = vld [vmem:[%s3281_s15 + $0x210] sm:$0xff]  ;;  %v292_v61 = vld [vmem:[%s3281_s15] sm:$0xff]  ;;  %v3397_v38 = vshrl.u32 %v491_v27, 7 }
  0x4d   : > { %565 = vmatprep.subr.mxu0 %v303_v39  ;;  %635 = vmatpush1.msra.mxu1 %v368_v40  ;;  %v357_v62 = vld [vmem:[%s3281_s15 + $0x208] sm:$0xff]  ;;  %v355_v63 = vld [vmem:[%s3281_s15 + $0x1f8] sm:$0xff]  ;;  %v356_v0 = vld [vmem:[%s3281_s15 + $0x200] sm:$0xff]  ;;  %v506_v39 = vunpack.c.0.s8 %v505_v29 }
  0x4e   : > { %566 = vmatpush1.msra.mxu0 %v302_v41  ;;  %636 = vmatprep.subr.mxu1 %v367_v42  ;;  %v354_v1 = vld [vmem:[%s3281_s15 + $0x1f0] sm:$0xff]  ;;  %v419_v2 = vld [vmem:[%s3281_s15 + $0x3f8] sm:$0xff]  ;;  %v353_v3 = vld [vmem:[%s3281_s15 + $0x1e8] sm:$0xff] }
  0x4f   : > { %567 = vmatprep.subr.mxu0 %v301_v43  ;;  %637 = vmatpush1.msra.mxu1 %v366_v44  ;;  %v418_v4 = vld [vmem:[%s3281_s15 + $0x3f0] sm:$0xff]  ;;  %v352_v5 = vld [vmem:[%s3281_s15 + $0x1e0] sm:$0xff]  ;;  %v417_v6 = vld [vmem:[%s3281_s15 + $0x3e8] sm:$0xff] }
  0x50   : > { %568 = vmatpush1.msra.mxu0 %v300_v45  ;;  %638 = vmatprep.subr.mxu1 %v365_v46  ;;  %v351_v7 = vld [vmem:[%s3281_s15 + $0x1d8] sm:$0xff]  ;;  %v416_v8 = vld [vmem:[%s3281_s15 + $0x3e0] sm:$0xff]  ;;  %v350_v9 = vld [vmem:[%s3281_s15 + $0x1d0] sm:$0xff] }
  0x51   : > { %569 = vmatprep.subr.mxu0 %v299_v47  ;;  %639 = vmatpush1.msra.mxu1 %v364_v48  ;;  %v415_v10 = vld [vmem:[%s3281_s15 + $0x3d8] sm:$0xff]  ;;  %v349_v11 = vld [vmem:[%s3281_s15 + $0x1c8] sm:$0xff]  ;;  %v414_v12 = vld [vmem:[%s3281_s15 + $0x3d0] sm:$0xff]  ;;  %v3413_v48 = vsub.s32 %v506_v39, %v3397_v38 }
  0x52   : > { %570 = vmatpush1.msra.mxu0 %v298_v49  ;;  %640 = vmatprep.subr.mxu1 %v363_v50  ;;  %v348_v13 = vld [vmem:[%s3281_s15 + $0x1c0] sm:$0xff]  ;;  %v413_v14 = vld [vmem:[%s3281_s15 + $0x3c8] sm:$0xff]  ;;  %v347_v15 = vld [vmem:[%s3281_s15 + $0x1b8] sm:$0xff] }
  0x53   : > { %571 = vmatprep.subr.mxu0 %v297_v51  ;;  %641 = vmatpush1.msra.mxu1 %v362_v52  ;;  %v412_v16 = vld [vmem:[%s3281_s15 + $0x3c0] sm:$0xff]  ;;  %v346_v17 = vld [vmem:[%s3281_s15 + $0x1b0] sm:$0xff]  ;;  %v411_v18 = vld [vmem:[%s3281_s15 + $0x3b8] sm:$0xff] }
  0x54   : > { %572 = vmatpush1.msra.mxu0 %v296_v53  ;;  %642 = vmatprep.subr.mxu1 %v361_v54  ;;  %v345_v19 = vld [vmem:[%s3281_s15 + $0x1a8] sm:$0xff]  ;;  %v410_v20 = vld [vmem:[%s3281_s15 + $0x3b0] sm:$0xff]  ;;  %v344_v21 = vld [vmem:[%s3281_s15 + $0x1a0] sm:$0xff] }
  0x55   : > { %573 = vmatprep.subr.mxu0 %v295_v55  ;;  %643 = vmatpush1.msra.mxu1 %v360_v56  ;;  %v409_v22 = vld [vmem:[%s3281_s15 + $0x3a8] sm:$0xff]  ;;  %v343_v23 = vld [vmem:[%s3281_s15 + $0x198] sm:$0xff]  ;;  %v408_v24 = vld [vmem:[%s3281_s15 + $0x3a0] sm:$0xff] }
  0x56   : > { %574 = vmatpush1.msra.mxu0 %v294_v57  ;;  %644 = vmatprep.subr.mxu1 %v359_v58  ;;  %v342_v25 = vld [vmem:[%s3281_s15 + $0x190] sm:$0xff]  ;;  %v407_v26 = vld [vmem:[%s3281_s15 + $0x398] sm:$0xff]  ;;  %v341_v30 = vld [vmem:[%s3281_s15 + $0x188] sm:$0xff] }
  0x57   : > { %575 = vmatprep.subr.mxu0 %v293_v59  ;;  %645 = vmatpush1.msra.mxu1 %v358_v60  ;;  %v406_v31 = vld [vmem:[%s3281_s15 + $0x390] sm:$0xff]  ;;  %v340_v32 = vld [vmem:[%s3281_s15 + $0x180] sm:$0xff]  ;;  %v405_v33 = vld [vmem:[%s3281_s15 + $0x388] sm:$0xff] }
  0x58   : > { %576 = vmatpush1.msra.mxu0 %v292_v61  ;;  %646 = vmatprep.subr.mxu1 %v357_v62  ;;  %v339_v34 = vld [vmem:[%s3281_s15 + $0x178] sm:$0xff]  ;;  %v404_v35 = vld [vmem:[%s3281_s15 + $0x380] sm:$0xff]  ;;  %v338_v36 = vld [vmem:[%s3281_s15 + $0x170] sm:$0xff] }
  0x59   : > { %577 = vmatprep.subr.mxu0 %v355_v63  ;;  %647 = vmatpush1.msra.mxu1 %v356_v0  ;;  %v403_v37 = vld [vmem:[%s3281_s15 + $0x378] sm:$0xff]  ;;  %v337_v40 = vld [vmem:[%s3281_s15 + $0x168] sm:$0xff]  ;;  %v402_v41 = vld [vmem:[%s3281_s15 + $0x370] sm:$0xff] }
  0x5a   : > { %578 = vmatpush2.msra.mxu0 %v354_v1  ;;  %648 = vmatprep.subr.mxu1 %v419_v2  ;;  %v336_v42 = vld [vmem:[%s3281_s15 + $0x160] sm:$0xff]  ;;  %v401_v43 = vld [vmem:[%s3281_s15 + $0x368] sm:$0xff]  ;;  %v335_v44 = vld [vmem:[%s3281_s15 + $0x158] sm:$0xff] }
  0x5b   : > { %579 = vmatprep.subr.mxu0 %v353_v3  ;;  %649 = vmatpush2.msra.mxu1 %v418_v4  ;;  %v400_v45 = vld [vmem:[%s3281_s15 + $0x360] sm:$0xff]  ;;  %v334_v46 = vld [vmem:[%s3281_s15 + $0x150] sm:$0xff]  ;;  %v399_v47 = vld [vmem:[%s3281_s15 + $0x358] sm:$0xff] }
  0x5c   : > { %580 = vmatpush2.msra.mxu0 %v352_v5  ;;  %650 = vmatprep.subr.mxu1 %v417_v6  ;;  %v333_v49 = vld [vmem:[%s3281_s15 + $0x148] sm:$0xff]  ;;  %v398_v50 = vld [vmem:[%s3281_s15 + $0x350] sm:$0xff]  ;;  %v332_v52 = vld [vmem:[%s3281_s15 + $0x140] sm:$0xff] }
  0x5d   : > { %581 = vmatprep.subr.mxu0 %v351_v7  ;;  %651 = vmatpush2.msra.mxu1 %v416_v8  ;;  %v290_v51 = vld [vmem:[%s3406_s21] sm:$0xff]  ;;  %v397_v53 = vld [vmem:[%s3281_s15 + $0x348] sm:$0xff]  ;;  %v331_v54 = vld [vmem:[%s3281_s15 + $0x138] sm:$0xff] }
  0x5e   : > { %582 = vmatpush2.msra.mxu0 %v350_v9  ;;  %652 = vmatprep.subr.mxu1 %v415_v10  ;;  %v396_v55 = vld [vmem:[%s3281_s15 + $0x340] sm:$0xff]  ;;  %v330_v56 = vld [vmem:[%s3281_s15 + $0x130] sm:$0xff]  ;;  %v395_v57 = vld [vmem:[%s3281_s15 + $0x338] sm:$0xff]  ;;  %v510_v58 = vrot.slane %v290_v51, %v3413_v48  ;;  %v503_v59 = vcombine.high %v290_v51, %v290_v51 }
  0x5f   : > { %583 = vmatprep.subr.mxu0 %v349_v11  ;;  %653 = vmatpush2.msra.mxu1 %v414_v12  ;;  %v329_v60 = vld [vmem:[%s3281_s15 + $0x128] sm:$0xff]  ;;  %v394_v61 = vld [vmem:[%s3281_s15 + $0x330] sm:$0xff]  ;;  %v328_v62 = vld [vmem:[%s3281_s15 + $0x120] sm:$0xff] }
  0x60   : > { %584 = vmatpush2.msra.mxu0 %v348_v13  ;;  %654 = vmatprep.subr.mxu1 %v413_v14  ;;  %v393_v63 = vld [vmem:[%s3281_s15 + $0x328] sm:$0xff]  ;;  %v327_v0 = vld [vmem:[%s3281_s15 + $0x118] sm:$0xff]  ;;  %v392_v1 = vld [vmem:[%s3281_s15 + $0x320] sm:$0xff]  ;;  %v518_v4 = vcombine.high %v510_v58, %v510_v58  ;;  %v517_v5 = vrot.slane %v503_v59, %v3413_v48 }
  0x61   : > { %585 = vmatprep.subr.mxu0 %v347_v15  ;;  %655 = vmatpush2.msra.mxu1 %v412_v16  ;;  %v326_v2 = vld [vmem:[%s3281_s15 + $0x110] sm:$0xff]  ;;  %v391_v3 = vld [vmem:[%s3281_s15 + $0x318] sm:$0xff]  ;;  %v325_v6 = vld [vmem:[%s3281_s15 + $0x108] sm:$0xff] }
  0x62   : > { %586 = vmatpush2.msra.mxu0 %v346_v17  ;;  %656 = vmatprep.subr.mxu1 %v411_v18  ;;  %v324_v7 = vld [vmem:[%s3281_s15 + $0x100] sm:$0xff]  ;;  %v291_v8 = vld [vmem:[%s3406_s21 + $0x8] sm:$0x3f]  ;;  %v390_v9 = vld [vmem:[%s3281_s15 + $0x310] sm:$0xff]  ;;  %v519_v13 = vcombine.high %v517_v5, %v517_v5 }
  0x63   : > { %587 = vmatprep.subr.mxu0 %v345_v19  ;;  %657 = vmatpush2.msra.mxu1 %v410_v20  ;;  %v389_v10 = vld [vmem:[%s3281_s15 + $0x308] sm:$0xff]  ;;  %v451_v11 = vld [vmem:[%s3281_s15 + $0x4f8] sm:$0xff]  ;;  %v388_v12 = vld [vmem:[%s3281_s15 + $0x300] sm:$0xff]  ;;  %v3443_v15 = vrot.slane %v291_v8, %v3413_v48  ;;  %v520_v19 = vcombine.high %v291_v8, %v291_v8 }
  0x64   : > { %588 = vmatpush2.msra.mxu0 %v344_v21  ;;  %658 = vmatprep.subr.mxu1 %v409_v22  ;;  %v450_v14 = vld [vmem:[%s3281_s15 + $0x4f0] sm:$0xff]  ;;  %v449_v16 = vld [vmem:[%s3281_s15 + $0x4e8] sm:$0xff]  ;;  %v448_v17 = vld [vmem:[%s3281_s15 + $0x4e0] sm:$0xff] }
  0x65   : > { %589 = vmatprep.subr.mxu0 %v343_v23  ;;  %659 = vmatpush2.msra.mxu1 %v408_v24  ;;  %v487_v18 = vld [vmem:[%s3281_s15 + $0x618] sm:$0xff]  ;;  %v486_v21 = vld [vmem:[%s3281_s15 + $0x610] sm:$0xff]  ;;  %v485_v23 = vld [vmem:[%s3281_s15 + $0x608] sm:$0xff]  ;;  %v535_v24 = vcombine.high %v3443_v15, %v3443_v15  ;;  %v534_v28 = vrot.slane %v520_v19, %v3413_v48 }
  0x66   : > { %590 = vmatpush2.msra.mxu0 %v342_v25  ;;  %660 = vmatprep.subr.mxu1 %v407_v26  ;;  %v447_v20 = vld [vmem:[%s3281_s15 + $0x4d8] sm:$0xff]  ;;  %v446_v22 = vld [vmem:[%s3281_s15 + $0x4d0] sm:$0xff]  ;;  %v445_v25 = vld [vmem:[%s3281_s15 + $0x4c8] sm:$0xff] }
  0x67   : > { %591 = vmatprep.subr.mxu0 %v341_v30  ;;  %661 = vmatpush2.msra.mxu1 %v406_v31  ;;  %v444_v26 = vld [vmem:[%s3281_s15 + $0x4c0] sm:$0xff]  ;;  %v443_v29 = vld [vmem:[%s3281_s15 + $0x4b8] sm:$0xff]  ;;  %v442_v30 = vld [vmem:[%s3281_s15 + $0x4b0] sm:$0xff] }
  0x68   : > { %592 = vmatpush2.msra.mxu0 %v340_v32  ;;  %662 = vmatprep.subr.mxu1 %v405_v33  ;;  %v484_v27 = vld [vmem:[%s3281_s15 + $0x600] sm:$0xff]  ;;  %v441_v31 = vld [vmem:[%s3281_s15 + $0x4a8] sm:$0xff]  ;;  %v3163_v33 = vmov 0.0   ;;  %v435_v39 = vld [vmem:[%s3281_s15 + $0x478] sm:$0xff] }
  0x69   : > { %593 = vmatprep.subr.mxu0 %v339_v34  ;;  %663 = vmatpush2.msra.mxu1 %v404_v35  ;;  %v440_v32 = vld [vmem:[%s3281_s15 + $0x4a0] sm:$0xff]  ;;  %v439_v34 = vld [vmem:[%s3281_s15 + $0x498] sm:$0xff]  ;;  %v438_v35 = vld [vmem:[%s3281_s15 + $0x490] sm:$0xff] }
  0x6a   : > { %594 = vmatpush2.msra.mxu0 %v338_v36  ;;  %664 = vmatprep.subr.mxu1 %v403_v37  ;;  %v437_v36 = vld [vmem:[%s3281_s15 + $0x488] sm:$0xff]  ;;  %v436_v37 = vld [vmem:[%s3281_s15 + $0x480] sm:$0xff]  ;;  %v467_v8 = vld [vmem:[%s3281_s15 + $0x578] sm:$0xff] }
  0x6b   : > { %595 = vmatprep.subr.mxu0 %v337_v40  ;;  %665 = vmatpush2.msra.mxu1 %v402_v41  ;;  %v434_v40 = vld [vmem:[%s3281_s15 + $0x470] sm:$0xff]  ;;  %v433_v41 = vld [vmem:[%s3281_s15 + $0x468] sm:$0xff]  ;;  %v424_v51 = vld [vmem:[%s3281_s15 + $0x420] sm:$0xff] }
  0x6c   : > { %596 = vmatpush2.msra.mxu0 %v336_v42  ;;  %666 = vmatprep.subr.mxu1 %v401_v43  ;;  %v432_v42 = vld [vmem:[%s3281_s15 + $0x460] sm:$0xff]  ;;  %v431_v43 = vld [vmem:[%s3281_s15 + $0x458] sm:$0xff]  ;;  %v457_v19 = vld [vmem:[%s3281_s15 + $0x528] sm:$0xff] }
  0x6d   : > { %597 = vmatprep.subr.mxu0 %v335_v44  ;;  %667 = vmatpush2.msra.mxu1 %v400_v45  ;;  %v430_v44 = vld [vmem:[%s3281_s15 + $0x450] sm:$0xff]  ;;  %v429_v45 = vld [vmem:[%s3281_s15 + $0x448] sm:$0xff]  ;;  %v480_v59 = vld [vmem:[%s3281_s15 + $0x5e0] sm:$0xff] }
  0x6e   : > { %598 = vmatpush2.msra.mxu0 %v334_v46  ;;  %668 = vmatprep.subr.mxu1 %v399_v47  ;;  %v428_v46 = vld [vmem:[%s3281_s15 + $0x440] sm:$0xff]  ;;  %v427_v47 = vld [vmem:[%s3281_s15 + $0x438] sm:$0xff] }
  0x6f   : > { %599 = vmatprep.subr.mxu0 %v333_v49  ;;  %669 = vmatpush2.msra.mxu1 %v398_v50  ;;  %v426_v49 = vld [vmem:[%s3281_s15 + $0x430] sm:$0xff]  ;;  %v425_v50 = vld [vmem:[%s3281_s15 + $0x428] sm:$0xff] }
  0x70   : > { %600 = vmatpush2.msra.mxu0 %v332_v52  ;;  %670 = vmatprep.subr.mxu1 %v397_v53  ;;  %v423_v52 = vld [vmem:[%s3281_s15 + $0x418] sm:$0xff]  ;;  %v422_v53 = vld [vmem:[%s3281_s15 + $0x410] sm:$0xff] }
  0x71   : > { %601 = vmatprep.subr.mxu0 %v331_v54  ;;  %671 = vmatpush2.msra.mxu1 %v396_v55  ;;  %v421_v54 = vld [vmem:[%s3281_s15 + $0x408] sm:$0xff]  ;;  %v420_v55 = vld [vmem:[%s3281_s15 + $0x400] sm:$0xff] }
  0x72   : > { %602 = vmatpush2.msra.mxu0 %v330_v56  ;;  %672 = vmatprep.subr.mxu1 %v395_v57  ;;  %v483_v56 = vld [vmem:[%s3281_s15 + $0x5f8] sm:$0xff]  ;;  %v482_v57 = vld [vmem:[%s3281_s15 + $0x5f0] sm:$0xff] }
  0x73   : > { %603 = vmatprep.subr.mxu0 %v329_v60  ;;  %673 = vmatpush2.msra.mxu1 %v394_v61  ;;  %v479_v60 = vld [vmem:[%s3281_s15 + $0x5d8] sm:$0xff]  ;;  %v478_v61 = vld [vmem:[%s3281_s15 + $0x5d0] sm:$0xff] }
  0x74   : > { %604 = vmatpush2.msra.mxu0 %v328_v62  ;;  %674 = vmatprep.subr.mxu1 %v393_v63  ;;  %v477_v62 = vld [vmem:[%s3281_s15 + $0x5c8] sm:$0xff]  ;;  %v476_v63 = vld [vmem:[%s3281_s15 + $0x5c0] sm:$0xff] }
  0x75   : > { %605 = vmatprep.subr.mxu0 %v327_v0  ;;  %675 = vmatpush2.msra.mxu1 %v392_v1  ;;  %v475_v0 = vld [vmem:[%s3281_s15 + $0x5b8] sm:$0xff]  ;;  %v474_v1 = vld [vmem:[%s3281_s15 + $0x5b0] sm:$0xff] }
  0x76   : > { %606 = vmatpush2.msra.mxu0 %v326_v2  ;;  %676 = vmatprep.subr.mxu1 %v391_v3  ;;  %v473_v2 = vld [vmem:[%s3281_s15 + $0x5a8] sm:$0xff]  ;;  %v472_v3 = vld [vmem:[%s3281_s15 + $0x5a0] sm:$0xff] }
  0x77   : > { %607 = vmatprep.subr.mxu0 %v325_v6  ;;  %609 = vmatprep.mubr.f32.mxu0 %v518_v4  ;;  %v471_v4 = vld [vmem:[%s3281_s15 + $0x598] sm:$0xff]  ;;  %v469_v6 = vld [vmem:[%s3281_s15 + $0x588] sm:$0xff] }
  0x78   : > { %608 = vmatpush2.msra.mxu0 %v324_v7  ;;  %677 = vmatpush2.msra.mxu1 %v390_v9  ;;  %v468_v7 = vld [vmem:[%s3281_s15 + $0x580] sm:$0xff]  ;;  %v466_v9 = vld [vmem:[%s3281_s15 + $0x570] sm:$0xff] }
  0x79   : > { %610 = vmatmul.mubr.f32.vlgmr.msra.gmra.mxu0 %v510_v58  ;;  %678 = vmatprep.subr.mxu1 %v389_v10  ;;  %v481_v58 = vld [vmem:[%s3281_s15 + $0x5e8] sm:$0xff] }
  0x7a   : > { %687 = vmatprep.subr.mxu0 %v451_v11  ;;  %679 = vmatpush2.msra.mxu1 %v388_v12  ;;  %v465_v10 = vld [vmem:[%s3281_s15 + $0x568] sm:$0xff]  ;;  %v464_v11 = vld [vmem:[%s3281_s15 + $0x560] sm:$0xff]  ;;  %v463_v12 = vld [vmem:[%s3281_s15 + $0x558] sm:$0xff] }
  0x7b   : > { %680 = vmatprep.mubr.f32.mxu1 %v519_v13  ;;  %688 = vmatpush1.msra.mxu0 %v450_v14  ;;  %v462_v13 = vld [vmem:[%s3281_s15 + $0x550] sm:$0xff]  ;;  %v461_v14 = vld [vmem:[%s3281_s15 + $0x548] sm:$0xff] }
  0x7c   : > { %681 = vmatmul.mubr.f32.vlgmr.msra.gmra.mxu1 %v517_v5  ;;  %689 = vmatprep.subr.mxu0 %v449_v16  ;;  %v470_v5 = vld [vmem:[%s3281_s15 + $0x590] sm:$0xff]  ;;  %v460_v16 = vld [vmem:[%s3281_s15 + $0x540] sm:$0xff] }
  0x7d   : > { %690 = vmatpush1.msra.mxu0 %v448_v17  ;;  %786 = vmatprep.subr.mxu1 %v487_v18  ;;  %v459_v17 = vld [vmem:[%s3281_s15 + $0x538] sm:$0xff]  ;;  %v458_v18 = vld [vmem:[%s3281_s15 + $0x530] sm:$0xff] }
  0x7e   : > { %691 = vmatprep.subr.mxu0 %v447_v20  ;;  %787 = vmatpush1.msra.mxu1 %v486_v21  ;;  %v456_v20 = vld [vmem:[%s3281_s15 + $0x520] sm:$0xff]  ;;  %v455_v21 = vld [vmem:[%s3281_s15 + $0x518] sm:$0xff] }
  0x7f   : > { %692 = vmatpush1.msra.mxu0 %v446_v22  ;;  %788 = vmatprep.subr.mxu1 %v485_v23  ;;  %v454_v22 = vld [vmem:[%s3281_s15 + $0x510] sm:$0xff]  ;;  %v453_v23 = vld [vmem:[%s3281_s15 + $0x508] sm:$0xff] }
  0x80   : > { %693 = vmatprep.subr.mxu0 %v445_v25  ;;  %751 = vmatprep.mubr.f32.mxu0 %v535_v24  ;;  %v452_v24 = vld [vmem:[%s3281_s15 + $0x500] sm:$0xff]  ;;  %v493_v25 = vsub.s32 0, %v3397_v38 }
  0x81   : > { %694 = vmatpush1.msra.mxu0 %v444_v26  ;;  %789 = vmatpush1.msra.mxu1 %v484_v27  ;;  %v2336_v26 = vld [vmem:[%s3281_s15 + $0x620] ss:$8 sm:$0x3]  ;;  %v497_v27 = vsub.s32 1, %v3397_v38 }
  0x82   : > { %695 = vmatprep.subr.mxu0 %v443_v29  ;;  %822 = vmatprep.mubr.f32.mxu1 %v3163_v33  ;;  %v494_v29 = vrot.slane %v2336_v26, %v493_v25 }
  0x83   : > { %696 = vmatpush1.msra.mxu0 %v442_v30  ;;  %2337 = vmatmul.mubr.msk.f32.vlgmr.msra.gmra.mxu1 %vm542_vm0, %v534_v28  ;;  %v498_v30 = vrot.slane %v2336_v26, %v497_v27 }
  0x84   : > { %697 = vmatprep.subr.mxu0 %v441_v31 }
  0x85   : > { %698 = vmatpush1.msra.mxu0 %v440_v32 }
  0x86   : > { %699 = vmatprep.subr.mxu0 %v439_v34 }
  0x87   : > { %700 = vmatpush1.msra.mxu0 %v438_v35 }
  0x88   : > { %701 = vmatprep.subr.mxu0 %v437_v36 }
  0x89   : > { %702 = vmatpush1.msra.mxu0 %v436_v37 }
  0x8a   : > { %703 = vmatprep.subr.mxu0 %v435_v39 }
  0x8b   : > { %704 = vmatpush1.msra.mxu0 %v434_v40 }
  0x8c   : > { %705 = vmatprep.subr.mxu0 %v433_v41 }
  0x8d   : > { %706 = vmatpush1.msra.mxu0 %v432_v42 }
  0x8e   : > { %707 = vmatprep.subr.mxu0 %v431_v43 }
  0x8f   : > { %708 = vmatpush1.msra.mxu0 %v430_v44 }
  0x90   : > { %709 = vmatprep.subr.mxu0 %v429_v45 }
  0x91   : > { %710 = vmatpush1.msra.mxu0 %v428_v46 }
  0x92   : > { %711 = vmatprep.subr.mxu0 %v427_v47 }
  0x93   : > { %712 = vmatpush1.msra.mxu0 %v426_v49 }
  0x94   : > { %713 = vmatprep.subr.mxu0 %v425_v50 }
  0x95   : > { %714 = vmatpush1.msra.mxu0 %v424_v51 }
  0x96   : > { %715 = vmatprep.subr.mxu0 %v423_v52 }
  0x97   : > { %716 = vmatpush1.msra.mxu0 %v422_v53 }
  0x98   : > { %717 = vmatprep.subr.mxu0 %v421_v54 }
  0x99   : > { %718 = vmatpush1.msra.mxu0 %v420_v55 }
  0x9a   : > { %719 = vmatprep.subr.mxu0 %v483_v56 }
  0x9b   : > { %720 = vmatpush2.msra.mxu0 %v482_v57 }
  0x9c   : > { %721 = vmatprep.subr.mxu0 %v481_v58 }
  0x9d   : > { %722 = vmatpush2.msra.mxu0 %v480_v59 }
  0x9e   : > { %723 = vmatprep.subr.mxu0 %v479_v60 }
  0x9f   : > { %724 = vmatpush2.msra.mxu0 %v478_v61 }
  0xa0   : > { %725 = vmatprep.subr.mxu0 %v477_v62 }
  0xa1   : > { %726 = vmatpush2.msra.mxu0 %v476_v63 }
  0xa2   : > { %727 = vmatprep.subr.mxu0 %v475_v0 }
  0xa3   : > { %728 = vmatpush2.msra.mxu0 %v474_v1 }
  0xa4   : > { %729 = vmatprep.subr.mxu0 %v473_v2 }
  0xa5   : > { %730 = vmatpush2.msra.mxu0 %v472_v3 }
  0xa6   : > { %731 = vmatprep.subr.mxu0 %v471_v4 }
  0xa7   : > { %732 = vmatpush2.msra.mxu0 %v470_v5 }
  0xa8   : > { %733 = vmatprep.subr.mxu0 %v469_v6 }
  0xa9   : > { %734 = vmatpush2.msra.mxu0 %v468_v7 }
  0xaa   : > { %735 = vmatprep.subr.mxu0 %v467_v8 }
  0xab   : > { %736 = vmatpush2.msra.mxu0 %v466_v9 }
  0xac   : > { %737 = vmatprep.subr.mxu0 %v465_v10 }
  0xad   : > { %738 = vmatpush2.msra.mxu0 %v464_v11 }
  0xae   : > { %739 = vmatprep.subr.mxu0 %v463_v12 }
  0xaf   : > { %740 = vmatpush2.msra.mxu0 %v462_v13 }
  0xb0   : > { %741 = vmatprep.subr.mxu0 %v461_v14 }
  0xb1   : > { %742 = vmatpush2.msra.mxu0 %v460_v16 }
  0xb2   : > { %743 = vmatprep.subr.mxu0 %v459_v17 }
  0xb3   : > { %744 = vmatpush2.msra.mxu0 %v458_v18 }
  0xb4   : > { %745 = vmatprep.subr.mxu0 %v457_v19 }
  0xb5   : > { %746 = vmatpush2.msra.mxu0 %v456_v20 }
  0xb6   : > { %747 = vmatprep.subr.mxu0 %v455_v21 }
  0xb7   : > { %748 = vmatpush2.msra.mxu0 %v454_v22 }
  0xb8   : > { %749 = vmatprep.subr.mxu0 %v453_v23 }
  0xb9   : > { %750 = vmatpush2.msra.mxu0 %v452_v24 }
  0xba   : > { %752 = vmatmul.mubr.f32.vlgmr.msra.gmra.mxu0 %v3443_v15 }
 0x139   : > { %v611_v28 = vpop.f32.mrf.mxu0 }
 0x13a   : > { %v612_v33 = vadd.f32 %v611_v28, %v494_v29 }
 0x13b   : > { %v613_v31 = vpop.f32.mrf.mxu0 }
 0x13c   : > { %v682_v32 = vpop.f32.mrf.mxu1  ;;  %v614_v34 = vadd.f32 %v613_v31, %v498_v30 }
 0x13d   : > { %v683_v36 = vadd.f32 %v682_v32, %v612_v33 }
 0x13e   : > { %v684_v35 = vpop.f32.mrf.mxu1 }
 0x13f   : > { %v685_v40 = vadd.f32 %v684_v35, %v614_v34 }
 0x143   : > { %v824_v39 = vpop.f32.mrf.mxu1 }
 0x145   : > { %v826_v44 = vpop.f32.mrf.mxu1 }
 0x17a   : > { %v753_v37 = vpop.f32.mrf.mxu0 }
 0x17b   : > { %v754_v41 = vadd.f32 %v753_v37, %v683_v36 }
 0x17c   : > { %v755_v15 = vpop.f32.mrf.mxu0 }
 0x17d   : > { %v825_v42 = vadd.f32 %v824_v39, %v754_v41  ;;  %v756_v43 = vadd.f32 %v755_v15, %v685_v40 }
 0x17f   : > { %v827_v45 = vadd.f32 %v826_v44, %v756_v43  ;;  %v829_v38 = vmax.f32 %v825_v42, 0.0 }
 0x181   : > { %v830_v46 = vmax.f32 %v827_v45, 0.0  ;;  %849 = sbr.rel (%p2341_p4) target bundleno = 1351 (0x547), region = 44 }
 0x183   : > { %v833_v47 = vcombine.low %v829_v38, %v830_v46 }
 0x185   : > { %2340 = vst.sshfl [vmem:[%s844_s26] sm:$0x33 pattern:$0x76325410] %v833_v47 }
 0x186   : > { %v888_v49 = vld [vmem:[#allocation5 + $0xf8] sm:$0xff]  ;;  %v3164_v51 = vmov 0.0   ;;  %v887_v52 = vld [vmem:[#allocation5 + $0xf0] sm:$0xff]  ;;  %v886_v54 = vld [vmem:[#allocation5 + $0xe8] sm:$0xff]  ;;  %vm3165_vm1 = vmmov 0   ;;  %vm1629_vm2 = vcmask 523264  }
 0x187   : > { %v872_v50 = vld [vmem:[#allocation5 + $0x78] sm:$0xff]  ;;  %2557 = vmatprep.subr.mxu0 %v3164_v51  ;;  %2592 = vmatprep.subr.mxu1 %v3164_v51  ;;  %v871_v53 = vld [vmem:[#allocation5 + $0x70] sm:$0xff]  ;;  %v870_v55 = vld [vmem:[#allocation5 + $0x68] sm:$0xff]  ;;  %vm2109_vm3 = vcmask 261120   ;;  %vm2189_vm4 = vcmask 1024  }
 0x188   : > { %2558 = vmatpush3.msra.mxu0 %v888_v49  ;;  %2593 = vmatpush3.msra.mxu1 %v872_v50  ;;  %v885_v56 = vld [vmem:[#allocation5 + $0xe0] sm:$0xff]  ;;  %v884_v58 = vld [vmem:[#allocation5 + $0xd8] sm:$0xff]  ;;  %v883_v60 = vld [vmem:[#allocation5 + $0xd0] sm:$0xff] }
 0x189   : > { %2559 = vmatprep.subr.mxu0 %v3164_v51  ;;  %2594 = vmatprep.subr.mxu1 %v3164_v51  ;;  %v869_v57 = vld [vmem:[#allocation5 + $0x60] sm:$0xff]  ;;  %v868_v59 = vld [vmem:[#allocation5 + $0x58] sm:$0xff]  ;;  %v867_v61 = vld [vmem:[#allocation5 + $0x50] sm:$0xff] }
 0x18a   : > { %2560 = vmatpush3.msra.mxu0 %v887_v52  ;;  %2595 = vmatpush3.msra.mxu1 %v871_v53  ;;  %v882_v63 = vld [vmem:[#allocation5 + $0xc8] sm:$0xff]  ;;  %v881_v2 = vld [vmem:[#allocation5 + $0xc0] sm:$0xff]  ;;  %v880_v4 = vld [vmem:[#allocation5 + $0xb8] sm:$0xff] }
 0x18b   : > { %2561 = vmatprep.subr.mxu0 %v3164_v51  ;;  %2596 = vmatprep.subr.mxu1 %v3164_v51  ;;  %v866_v0 = vld [vmem:[#allocation5 + $0x48] sm:$0xff]  ;;  %v865_v3 = vld [vmem:[#allocation5 + $0x40] sm:$0xff]  ;;  %v864_v5 = vld [vmem:[#allocation5 + $0x38] sm:$0xff] }
 0x18c   : > { %2562 = vmatpush3.msra.mxu0 %v886_v54  ;;  %2597 = vmatpush3.msra.mxu1 %v870_v55  ;;  %v3530_v62 = vld [vmem:[#allocation2 + $0x4] sm:$0xf]  ;;  %v3538_v1 = vld [vmem:[#allocation2] sm:$0xf]  ;;  %v878_v8 = vld [vmem:[#allocation5 + $0xa8] sm:$0xff] }
 0x18d   : > { %2563 = vmatprep.subr.mxu0 %v3164_v51  ;;  %2598 = vmatprep.subr.mxu1 %v3164_v51  ;;  %2192 = vst [vmem:[%s3829_s4 + $0x2] sm:$0x3] %v3530_v62  ;;  %2191 = vst [vmem:[%s3829_s4] sm:$0x3] %v3538_v1  ;;  %v879_v6 = vld [vmem:[#allocation5 + $0xb0] sm:$0xff]  ;;  %v862_v9 = vld [vmem:[#allocation5 + $0x28] sm:$0xff] }
 0x18e   : > { %2564 = vmatpush3.msra.mxu0 %v885_v56  ;;  %2599 = vmatpush3.msra.mxu1 %v869_v57  ;;  %v863_v7 = vld [vmem:[#allocation5 + $0x30] sm:$0xff]  ;;  %v877_v10 = vld [vmem:[#allocation5 + $0xa0] sm:$0xff]  ;;  %v3554_v12 = vld [vmem:[#allocation2 + $0xc] sm:$0xf] }
 0x18f   : > { %2565 = vmatprep.subr.mxu0 %v3164_v51  ;;  %2600 = vmatprep.subr.mxu1 %v3164_v51  ;;  %v861_v11 = vld [vmem:[#allocation5 + $0x20] sm:$0xff]  ;;  %v3556_v13 = vld [vmem:[#allocation2 + $0x8] sm:$0xf]  ;;  %2194 = vst [vmem:[%s3829_s4 + $0x6] sm:$0x3] %v3554_v12  ;;  %v875_v17 = vld [vmem:[#allocation5 + $0x90] sm:$0xff] }
 0x190   : > { %2566 = vmatpush3.msra.mxu0 %v884_v58  ;;  %2601 = vmatpush3.msra.mxu1 %v868_v59  ;;  %v876_v14 = vld [vmem:[#allocation5 + $0x98] sm:$0xff]  ;;  %2193 = vst [vmem:[%s3829_s4 + $0x4] sm:$0x3] %v3556_v13  ;;  %v859_v18 = vld [vmem:[#allocation5 + $0x10] sm:$0xff]  ;;  %v874_v19 = vld [vmem:[#allocation5 + $0x88] sm:$0xff] }
 0x191   : > { %2567 = vmatprep.subr.mxu0 %v3164_v51  ;;  %2602 = vmatprep.subr.mxu1 %v3164_v51  ;;  %v860_v16 = vld [vmem:[#allocation5 + $0x18] sm:$0xff]  ;;  %v858_v20 = vld [vmem:[#allocation5 + $0x8] sm:$0xff]  ;;  %v873_v21 = vld [vmem:[#allocation5 + $0x80] sm:$0xff] }
 0x192   : > { %2568 = vmatpush3.msra.mxu0 %v883_v60  ;;  %2603 = vmatpush3.msra.mxu1 %v867_v61  ;;  %v857_v22 = vld [vmem:[#allocation5] sm:$0xff]  ;;  %v1067_v23 = vld [vmem:[#allocation5 + $0x208] sm:$0xff]  ;;  %v1065_v27 = vld [vmem:[#allocation5 + $0x1f8] sm:$0xff] }
 0x193   : > { %2569 = vmatprep.subr.mxu0 %v3164_v51  ;;  %2604 = vmatprep.subr.mxu1 %v3164_v51  ;;  %v1051_v24 = vld [vmem:[#allocation5 + $0x188] sm:$0xff]  ;;  %v1066_v25 = vld [vmem:[#allocation5 + $0x200] sm:$0xff]  ;;  %v1049_v28 = vld [vmem:[#allocation5 + $0x178] sm:$0xff] }
 0x194   : > { %2570 = vmatpush3.msra.mxu0 %v882_v63  ;;  %2605 = vmatpush3.msra.mxu1 %v866_v0  ;;  %v1050_v26 = vld [vmem:[#allocation5 + $0x180] sm:$0xff]  ;;  %v1064_v29 = vld [vmem:[#allocation5 + $0x1f0] sm:$0xff]  ;;  %v1063_v31 = vld [vmem:[#allocation5 + $0x1e8] sm:$0xff] }
 0x195   : > { %2571 = vmatprep.subr.mxu0 %v3164_v51  ;;  %2606 = vmatprep.subr.mxu1 %v3164_v51  ;;  %v1048_v30 = vld [vmem:[#allocation5 + $0x170] sm:$0xff]  ;;  %v1047_v32 = vld [vmem:[#allocation5 + $0x168] sm:$0xff]  ;;  %v1062_v33 = vld [vmem:[#allocation5 + $0x1e0] sm:$0xff] }
 0x196   : > { %2572 = vmatpush3.msra.mxu0 %v881_v2  ;;  %2607 = vmatpush3.msra.mxu1 %v865_v3  ;;  %v1046_v34 = vld [vmem:[#allocation5 + $0x160] sm:$0xff]  ;;  %v1061_v35 = vld [vmem:[#allocation5 + $0x1d8] sm:$0xff]  ;;  %v1060_v37 = vld [vmem:[#allocation5 + $0x1d0] sm:$0xff] }
 0x197   : > { %2573 = vmatprep.subr.mxu0 %v3164_v51  ;;  %2608 = vmatprep.subr.mxu1 %v3164_v51  ;;  %v1045_v36 = vld [vmem:[#allocation5 + $0x158] sm:$0xff]  ;;  %v1044_v39 = vld [vmem:[#allocation5 + $0x150] sm:$0xff]  ;;  %v1059_v40 = vld [vmem:[#allocation5 + $0x1c8] sm:$0xff] }
 0x198   : > { %2574 = vmatpush3.msra.mxu0 %v880_v4  ;;  %2609 = vmatpush3.msra.mxu1 %v864_v5  ;;  %v1043_v41 = vld [vmem:[#allocation5 + $0x148] sm:$0xff]  ;;  %v1058_v15 = vld [vmem:[#allocation5 + $0x1c0] sm:$0xff]  ;;  %v1057_v43 = vld [vmem:[#allocation5 + $0x1b8] sm:$0xff] }
 0x199   : > { %2575 = vmatprep.subr.mxu0 %v3164_v51  ;;  %2610 = vmatprep.subr.mxu1 %v3164_v51  ;;  %v1042_v42 = vld [vmem:[#allocation5 + $0x140] sm:$0xff]  ;;  %v1041_v44 = vld [vmem:[#allocation5 + $0x138] sm:$0xff]  ;;  %v1056_v45 = vld [vmem:[#allocation5 + $0x1b0] sm:$0xff] }
 0x19a   : > { %2576 = vmatpush3.msra.mxu0 %v879_v6  ;;  %2611 = vmatpush3.msra.mxu1 %v863_v7  ;;  %v1040_v38 = vld [vmem:[#allocation5 + $0x130] sm:$0xff]  ;;  %v1055_v46 = vld [vmem:[#allocation5 + $0x1a8] sm:$0xff]  ;;  %v1054_v49 = vld [vmem:[#allocation5 + $0x1a0] sm:$0xff] }
 0x19b   : > { %2577 = vmatprep.subr.mxu0 %v3164_v51  ;;  %2612 = vmatprep.subr.mxu1 %v3164_v51  ;;  %v1039_v47 = vld [vmem:[#allocation5 + $0x128] sm:$0xff]  ;;  %v1038_v50 = vld [vmem:[#allocation5 + $0x120] sm:$0xff]  ;;  %v1053_v52 = vld [vmem:[#allocation5 + $0x198] sm:$0xff] }
 0x19c   : > { %2578 = vmatpush3.msra.mxu0 %v878_v8  ;;  %2613 = vmatpush3.msra.mxu1 %v862_v9  ;;  %v1037_v53 = vld [vmem:[#allocation5 + $0x118] sm:$0xff]  ;;  %v1052_v54 = vld [vmem:[#allocation5 + $0x190] sm:$0xff]  ;;  %v1244_v60 = vld [vmem:[#allocation5 + $0x308] sm:$0xff] }
 0x19d   : > { %2579 = vmatprep.subr.mxu0 %v3164_v51  ;;  %2614 = vmatprep.subr.mxu1 %v3164_v51  ;;  %v1036_v55 = vld [vmem:[#allocation5 + $0x110] sm:$0xff]  ;;  %v1246_v56 = vld [vmem:[#allocation5 + $0x318] sm:$0xff]  ;;  %v1228_v61 = vld [vmem:[#allocation5 + $0x288] sm:$0xff] }
 0x19e   : > { %2580 = vmatpush3.msra.mxu0 %v877_v10  ;;  %2615 = vmatpush3.msra.mxu1 %v861_v11  ;;  %v1230_v57 = vld [vmem:[#allocation5 + $0x298] sm:$0xff]  ;;  %v1245_v58 = vld [vmem:[#allocation5 + $0x310] sm:$0xff]  ;;  %v1243_v63 = vld [vmem:[#allocation5 + $0x300] sm:$0xff] }
 0x19f   : > { %2581 = vmatprep.subr.mxu0 %v3164_v51  ;;  %2616 = vmatprep.subr.mxu1 %v3164_v51  ;;  %v1229_v59 = vld [vmem:[#allocation5 + $0x290] sm:$0xff]  ;;  %v1227_v0 = vld [vmem:[#allocation5 + $0x280] sm:$0xff]  ;;  %v1242_v2 = vld [vmem:[#allocation5 + $0x2f8] sm:$0xff] }
 0x1a0   : > { %2582 = vmatpush3.msra.mxu0 %v876_v14  ;;  %2617 = vmatpush3.msra.mxu1 %v860_v16  ;;  %v1226_v3 = vld [vmem:[#allocation5 + $0x278] sm:$0xff]  ;;  %v1241_v4 = vld [vmem:[#allocation5 + $0x2f0] sm:$0xff]  ;;  %v1240_v6 = vld [vmem:[#allocation5 + $0x2e8] sm:$0xff] }
 0x1a1   : > { %2583 = vmatprep.subr.mxu0 %v3164_v51  ;;  %2618 = vmatprep.subr.mxu1 %v3164_v51  ;;  %v1225_v5 = vld [vmem:[#allocation5 + $0x270] sm:$0xff]  ;;  %v1224_v7 = vld [vmem:[#allocation5 + $0x268] sm:$0xff]  ;;  %v1239_v8 = vld [vmem:[#allocation5 + $0x2e0] sm:$0xff] }
 0x1a2   : > { %2584 = vmatpush3.msra.mxu0 %v875_v17  ;;  %2619 = vmatpush3.msra.mxu1 %v859_v18  ;;  %v1223_v9 = vld [vmem:[#allocation5 + $0x260] sm:$0xff]  ;;  %v1238_v10 = vld [vmem:[#allocation5 + $0x2d8] sm:$0xff]  ;;  %v1237_v14 = vld [vmem:[#allocation5 + $0x2d0] sm:$0xff] }
 0x1a3   : > { %2585 = vmatprep.subr.mxu0 %v3164_v51  ;;  %2620 = vmatprep.subr.mxu1 %v3164_v51  ;;  %v1222_v11 = vld [vmem:[#allocation5 + $0x258] sm:$0xff]  ;;  %v1221_v16 = vld [vmem:[#allocation5 + $0x250] sm:$0xff]  ;;  %v1236_v17 = vld [vmem:[#allocation5 + $0x2c8] sm:$0xff] }
 0x1a4   : > { %2586 = vmatpush3.msra.mxu0 %v874_v19  ;;  %2621 = vmatpush3.msra.mxu1 %v858_v20  ;;  %v1220_v18 = vld [vmem:[#allocation5 + $0x248] sm:$0xff]  ;;  %v1235_v19 = vld [vmem:[#allocation5 + $0x2c0] sm:$0xff] }
 0x1a5   : > { %2587 = vmatprep.subr.mxu0 %v3164_v51  ;;  %2622 = vmatprep.subr.mxu1 %v3164_v51  ;;  %v1219_v20 = vld [vmem:[#allocation5 + $0x240] sm:$0xff] }
 0x1a6   : > { %2588 = vmatpush3.msra.mxu0 %v873_v21  ;;  %2589 = vmatprep.mubr.msk.f32.mxu0 %vm3165_vm1, %v3164_v51  ;;  %v1234_v21 = vld [vmem:[#allocation5 + $0x2b8] sm:$0xff] }
 0x1a7   : > { %2623 = vmatpush3.msra.mxu1 %v857_v22  ;;  %2624 = vmatprep.mubr.msk.f32.mxu1 %vm3165_vm1, %v3164_v51  ;;  %v1218_v22 = vld [vmem:[#allocation5 + $0x238] sm:$0xff] }
 0x1a8   : > { %2590 = vmatmul.mubr.f32.vlgmr.msra.gmra.mxu0 %v3530_v62  ;;  %2625 = vmatmul.mubr.f32.vlgmr.msra.gmra.mxu1 %v3538_v1 }
 0x1a9   : > { %2627 = vmatprep.subr.mxu0 %v3164_v51  ;;  %2662 = vmatprep.subr.mxu1 %v3164_v51 }
 0x1aa   : > { %2628 = vmatpush3.msra.mxu0 %v1067_v23  ;;  %2663 = vmatpush3.msra.mxu1 %v1051_v24  ;;  %v1233_v23 = vld [vmem:[#allocation5 + $0x2b0] sm:$0xff] }
 0x1ab   : > { %2629 = vmatprep.subr.mxu0 %v3164_v51  ;;  %2664 = vmatprep.subr.mxu1 %v3164_v51  ;;  %v1217_v24 = vld [vmem:[#allocation5 + $0x230] sm:$0xff] }
 0x1ac   : > { %2630 = vmatpush3.msra.mxu0 %v1066_v25  ;;  %2665 = vmatpush3.msra.mxu1 %v1050_v26  ;;  %v1334_v25 = vrot.slane %v3538_v1, %v3413_v48  ;;  %v1254_v26 = vrot.slane %v3556_v13, %v3413_v48 }
 0x1ad   : > { %2631 = vmatprep.subr.mxu0 %v3164_v51  ;;  %2666 = vmatprep.subr.mxu1 %v3164_v51 }
 0x1ae   : > { %2632 = vmatpush3.msra.mxu0 %v1065_v27  ;;  %2667 = vmatpush3.msra.mxu1 %v1049_v28  ;;  %v1232_v27 = vld [vmem:[#allocation5 + $0x2a8] sm:$0xff]  ;;  %v1255_v1 = vcombine.high %v1254_v26, %v1254_v26 }
 0x1af   : > { %2633 = vmatprep.subr.mxu0 %v3164_v51  ;;  %2668 = vmatprep.subr.mxu1 %v3164_v51  ;;  %v1216_v28 = vld [vmem:[#allocation5 + $0x228] sm:$0xff] }
 0x1b0   : > { %2634 = vmatpush3.msra.mxu0 %v1064_v29  ;;  %2669 = vmatpush3.msra.mxu1 %v1048_v30  ;;  %v1231_v29 = vld [vmem:[#allocation5 + $0x2a0] sm:$0xff]  ;;  %v1335_v30 = vcombine.high %v1334_v25, %v1334_v25 }
 0x1b1   : > { %2635 = vmatprep.subr.mxu0 %v3164_v51  ;;  %2670 = vmatprep.subr.mxu1 %v3164_v51 }
 0x1b2   : > { %2636 = vmatpush3.msra.mxu0 %v1063_v31  ;;  %2671 = vmatpush3.msra.mxu1 %v1047_v32  ;;  %v1445_v31 = vld [vmem:[#allocation5 + $0x428] sm:$0xff] }
 0x1b3   : > { %2637 = vmatprep.subr.mxu0 %v3164_v51  ;;  %2672 = vmatprep.subr.mxu1 %v3164_v51  ;;  %v1429_v32 = vld [vmem:[#allocation5 + $0x3a8] sm:$0xff] }
 0x1b4   : > { %2638 = vmatpush3.msra.mxu0 %v1062_v33  ;;  %2673 = vmatpush3.msra.mxu1 %v1046_v34  ;;  %v1444_v33 = vld [vmem:[#allocation5 + $0x420] sm:$0xff] }
 0x1b5   : > { %2639 = vmatprep.subr.mxu0 %v3164_v51  ;;  %2674 = vmatprep.subr.mxu1 %v3164_v51  ;;  %v1428_v34 = vld [vmem:[#allocation5 + $0x3a0] sm:$0xff] }
 0x1b6   : > { %2640 = vmatpush3.msra.mxu0 %v1061_v35  ;;  %2675 = vmatpush3.msra.mxu1 %v1045_v36  ;;  %v1443_v35 = vld [vmem:[#allocation5 + $0x418] sm:$0xff] }
 0x1b7   : > { %2641 = vmatprep.subr.mxu0 %v3164_v51  ;;  %2676 = vmatprep.subr.mxu1 %v3164_v51  ;;  %v1427_v36 = vld [vmem:[#allocation5 + $0x398] sm:$0xff] }
 0x1b8   : > { %2642 = vmatpush3.msra.mxu0 %v1060_v37  ;;  %2677 = vmatpush3.msra.mxu1 %v1044_v39  ;;  %v1442_v37 = vld [vmem:[#allocation5 + $0x410] sm:$0xff] }
 0x1b9   : > { %2643 = vmatprep.subr.mxu0 %v3164_v51  ;;  %2678 = vmatprep.subr.mxu1 %v3164_v51  ;;  %v1426_v39 = vld [vmem:[#allocation5 + $0x390] sm:$0xff] }
 0x1ba   : > { %2644 = vmatpush3.msra.mxu0 %v1059_v40  ;;  %2679 = vmatpush3.msra.mxu1 %v1043_v41  ;;  %v1441_v40 = vld [vmem:[#allocation5 + $0x408] sm:$0xff] }
 0x1bb   : > { %2645 = vmatprep.subr.mxu0 %v3164_v51  ;;  %2680 = vmatprep.subr.mxu1 %v3164_v51  ;;  %v1425_v41 = vld [vmem:[#allocation5 + $0x388] sm:$0xff] }
 0x1bc   : > { %2646 = vmatpush3.msra.mxu0 %v1058_v15  ;;  %2681 = vmatpush3.msra.mxu1 %v1042_v42  ;;  %v1440_v15 = vld [vmem:[#allocation5 + $0x400] sm:$0xff] }
 0x1bd   : > { %2647 = vmatprep.subr.mxu0 %v3164_v51  ;;  %2682 = vmatprep.subr.mxu1 %v3164_v51  ;;  %v1424_v42 = vld [vmem:[#allocation5 + $0x380] sm:$0xff] }
 0x1be   : > { %2648 = vmatpush3.msra.mxu0 %v1057_v43  ;;  %2683 = vmatpush3.msra.mxu1 %v1041_v44  ;;  %v1439_v43 = vld [vmem:[#allocation5 + $0x3f8] sm:$0xff] }
 0x1bf   : > { %2649 = vmatprep.subr.mxu0 %v3164_v51  ;;  %2684 = vmatprep.subr.mxu1 %v3164_v51  ;;  %v1423_v44 = vld [vmem:[#allocation5 + $0x378] sm:$0xff] }
 0x1c0   : > { %2650 = vmatpush3.msra.mxu0 %v1056_v45  ;;  %2685 = vmatpush3.msra.mxu1 %v1040_v38  ;;  %v1438_v45 = vld [vmem:[#allocation5 + $0x3f0] sm:$0xff] }
 0x1c1   : > { %2651 = vmatprep.subr.mxu0 %v3164_v51  ;;  %2686 = vmatprep.subr.mxu1 %v3164_v51  ;;  %v1422_v38 = vld [vmem:[#allocation5 + $0x370] sm:$0xff] }
 0x1c2   : > { %2652 = vmatpush3.msra.mxu0 %v1055_v46  ;;  %2687 = vmatpush3.msra.mxu1 %v1039_v47  ;;  %v1437_v46 = vld [vmem:[#allocation5 + $0x3e8] sm:$0xff] }
 0x1c3   : > { %2653 = vmatprep.subr.mxu0 %v3164_v51  ;;  %2688 = vmatprep.subr.mxu1 %v3164_v51  ;;  %v1421_v47 = vld [vmem:[#allocation5 + $0x368] sm:$0xff] }
 0x1c4   : > { %2654 = vmatpush3.msra.mxu0 %v1054_v49  ;;  %2689 = vmatpush3.msra.mxu1 %v1038_v50  ;;  %v1436_v49 = vld [vmem:[#allocation5 + $0x3e0] sm:$0xff] }
 0x1c5   : > { %2655 = vmatprep.subr.mxu0 %v3164_v51  ;;  %2690 = vmatprep.subr.mxu1 %v3164_v51  ;;  %v1420_v50 = vld [vmem:[#allocation5 + $0x360] sm:$0xff] }
 0x1c6   : > { %2656 = vmatpush3.msra.mxu0 %v1053_v52  ;;  %2691 = vmatpush3.msra.mxu1 %v1037_v53  ;;  %v1435_v52 = vld [vmem:[#allocation5 + $0x3d8] sm:$0xff] }
 0x1c7   : > { %2657 = vmatprep.subr.mxu0 %v3164_v51  ;;  %2692 = vmatprep.subr.mxu1 %v3164_v51  ;;  %v1419_v53 = vld [vmem:[#allocation5 + $0x358] sm:$0xff] }
 0x1c8   : > { %2658 = vmatpush3.msra.mxu0 %v1052_v54  ;;  %2659 = vmatprep.mubr.msk.f32.mxu0 %vm3165_vm1, %v3164_v51  ;;  %v1434_v54 = vld [vmem:[#allocation5 + $0x3d0] sm:$0xff] }
 0x1c9   : > { %2693 = vmatpush3.msra.mxu1 %v1036_v55  ;;  %2694 = vmatprep.mubr.msk.f32.mxu1 %vm3165_vm1, %v3164_v51  ;;  %v1418_v55 = vld [vmem:[#allocation5 + $0x350] sm:$0xff] }
 0x1ca   : > { %2660 = vmatmul.mubr.f32.vlgmr.msra.gmra.mxu0 %v3554_v12  ;;  %2695 = vmatmul.mubr.f32.vlgmr.msra.gmra.mxu1 %v3556_v13  ;;  %v1215_v13 = vld [vmem:[#allocation5 + $0x220] sm:$0xff] }
 0x1cb   : > { %2697 = vmatprep.subr.mxu0 %v3164_v51  ;;  %2732 = vmatprep.subr.mxu1 %v3164_v51 }
 0x1cc   : > { %2698 = vmatpush3.msra.mxu0 %v1246_v56  ;;  %2733 = vmatpush3.msra.mxu1 %v1230_v57  ;;  %v1433_v56 = vld [vmem:[#allocation5 + $0x3c8] sm:$0xff] }
 0x1cd   : > { %2699 = vmatprep.subr.mxu0 %v3164_v51  ;;  %2734 = vmatprep.subr.mxu1 %v3164_v51  ;;  %v1417_v57 = vld [vmem:[#allocation5 + $0x348] sm:$0xff] }
 0x1ce   : > { %2700 = vmatpush3.msra.mxu0 %v1245_v58  ;;  %2735 = vmatpush3.msra.mxu1 %v1229_v59  ;;  %v1432_v58 = vld [vmem:[#allocation5 + $0x3c0] sm:$0xff] }
 0x1cf   : > { %2701 = vmatprep.subr.mxu0 %v3164_v51  ;;  %2736 = vmatprep.subr.mxu1 %v3164_v51  ;;  %v1416_v59 = vld [vmem:[#allocation5 + $0x340] sm:$0xff] }
 0x1d0   : > { %2702 = vmatpush3.msra.mxu0 %v1244_v60  ;;  %2737 = vmatpush3.msra.mxu1 %v1228_v61  ;;  %v1533_v60 = vrot.slane %v3530_v62, %v3413_v48  ;;  %v1453_v61 = vrot.slane %v3554_v12, %v3413_v48  ;;  %v1414_v48 = vld [vmem:[#allocation5 + $0x330] sm:$0xff]  ;;  %v3700_v12 = vld [vmem:[#allocation5 + $0x478] sm:$0xff] }
 0x1d1   : > { %2703 = vmatprep.subr.mxu0 %v3164_v51  ;;  %2738 = vmatprep.subr.mxu1 %v3164_v51 }
 0x1d2   : > { %2704 = vmatpush3.msra.mxu0 %v1243_v63  ;;  %2739 = vmatpush3.msra.mxu1 %v1227_v0  ;;  %v1431_v63 = vld [vmem:[#allocation5 + $0x3b8] sm:$0xff]  ;;  %v1454_v62 = vcombine.high %v1453_v61, %v1453_v61  ;;  %v1946_v61 = vld [vmem:[#allocation5 + $0x548] sm:$0xff] }
 0x1d3   : > { %2705 = vmatprep.subr.mxu0 %v3164_v51  ;;  %2740 = vmatprep.subr.mxu1 %v3164_v51  ;;  %v1415_v0 = vld [vmem:[#allocation5 + $0x338] sm:$0xff] }
 0x1d4   : > { %2706 = vmatpush3.msra.mxu0 %v1242_v2  ;;  %2741 = vmatpush3.msra.mxu1 %v1226_v3  ;;  %v1430_v2 = vld [vmem:[#allocation5 + $0x3b0] sm:$0xff]  ;;  %v1534_v3 = vcombine.high %v1533_v60, %v1533_v60 }
 0x1d5   : > { %2707 = vmatprep.subr.mxu0 %v3164_v51  ;;  %2742 = vmatprep.subr.mxu1 %v3164_v51  ;;  %v1931_v60 = vld [vmem:[#allocation5 + $0x4d0] sm:$0xff] }
 0x1d6   : > { %2708 = vmatpush3.msra.mxu0 %v1241_v4  ;;  %2743 = vmatpush3.msra.mxu1 %v1225_v5  ;;  %v3702_v4 = vld [vmem:[#allocation5 + $0x4b8] sm:$0xff]  ;;  %v1619_v5 = vld [vmem:[#allocation5 + $0x470] sm:$0xff] }
 0x1d7   : > { %2709 = vmatprep.subr.mxu0 %v3164_v51  ;;  %2744 = vmatprep.subr.mxu1 %v3164_v51 }
 0x1d8   : > { %2710 = vmatpush3.msra.mxu0 %v1240_v6  ;;  %2745 = vmatpush3.msra.mxu1 %v1224_v7  ;;  %v3709_v6 = vld [vmem:[#allocation5 + $0x4b0] sm:$0xff]  ;;  %v1618_v7 = vld [vmem:[#allocation5 + $0x468] sm:$0xff] }
 0x1d9   : > { %2711 = vmatprep.subr.mxu0 %v3164_v51  ;;  %2746 = vmatprep.subr.mxu1 %v3164_v51 }
 0x1da   : > { %2712 = vmatpush3.msra.mxu0 %v1239_v8  ;;  %2747 = vmatpush3.msra.mxu1 %v1223_v9  ;;  %v3714_v8 = vld [vmem:[#allocation5 + $0x4a8] sm:$0xff]  ;;  %v1617_v9 = vld [vmem:[#allocation5 + $0x460] sm:$0xff] }
 0x1db   : > { %2713 = vmatprep.subr.mxu0 %v3164_v51  ;;  %2748 = vmatprep.subr.mxu1 %v3164_v51 }
 0x1dc   : > { %2714 = vmatpush3.msra.mxu0 %v1238_v10  ;;  %2749 = vmatpush3.msra.mxu1 %v1222_v11  ;;  %v3719_v10 = vld [vmem:[#allocation5 + $0x4a0] sm:$0xff]  ;;  %v1616_v11 = vld [vmem:[#allocation5 + $0x458] sm:$0xff] }
 0x1dd   : > { %2715 = vmatprep.subr.mxu0 %v3164_v51  ;;  %2750 = vmatprep.subr.mxu1 %v3164_v51 }
 0x1de   : > { %2716 = vmatpush3.msra.mxu0 %v1237_v14  ;;  %2751 = vmatpush3.msra.mxu1 %v1221_v16  ;;  %v3724_v14 = vld [vmem:[#allocation5 + $0x498] sm:$0xff]  ;;  %v1615_v16 = vld [vmem:[#allocation5 + $0x450] sm:$0xff] }
 0x1df   : > { %2717 = vmatprep.subr.mxu0 %v3164_v51  ;;  %2752 = vmatprep.subr.mxu1 %v3164_v51 }
 0x1e0   : > { %2718 = vmatpush3.msra.mxu0 %v1236_v17  ;;  %2753 = vmatpush3.msra.mxu1 %v1220_v18  ;;  %v3729_v17 = vld [vmem:[#allocation5 + $0x490] sm:$0xff]  ;;  %v1614_v18 = vld [vmem:[#allocation5 + $0x448] sm:$0xff] }
 0x1e1   : > { %2719 = vmatprep.subr.mxu0 %v3164_v51  ;;  %2754 = vmatprep.subr.mxu1 %v3164_v51 }
 0x1e2   : > { %2720 = vmatpush3.msra.mxu0 %v1235_v19  ;;  %2755 = vmatpush3.msra.mxu1 %v1219_v20  ;;  %v3734_v19 = vld [vmem:[#allocation5 + $0x488] sm:$0xff]  ;;  %v1613_v20 = vld [vmem:[#allocation5 + $0x440] sm:$0xff] }
 0x1e3   : > { %2721 = vmatprep.subr.mxu0 %v3164_v51  ;;  %2756 = vmatprep.subr.mxu1 %v3164_v51 }
 0x1e4   : > { %2722 = vmatpush3.msra.mxu0 %v1234_v21  ;;  %2757 = vmatpush3.msra.mxu1 %v1218_v22  ;;  %v1621_v21 = vld [vmem:[#allocation5 + $0x480] sm:$0xff] }
 0x1e5   : > { %2723 = vmatprep.subr.mxu0 %v3164_v51  ;;  %2758 = vmatprep.subr.mxu1 %v3164_v51 }
 0x1e6   : > { %2724 = vmatpush3.msra.mxu0 %v1233_v23  ;;  %2759 = vmatpush3.msra.mxu1 %v1217_v24  ;;  %v2342_v24 = vld [vmem:[#allocation5 + $0x100] ss:$0 sm:$0xff] }
 0x1e7   : > { %2725 = vmatprep.subr.mxu0 %v3164_v51  ;;  %2760 = vmatprep.subr.mxu1 %v3164_v51 }
 0x1e8   : > { %2726 = vmatpush3.msra.mxu0 %v1232_v27  ;;  %2761 = vmatpush3.msra.mxu1 %v1216_v28 }
 0x1e9   : > { %2727 = vmatprep.subr.mxu0 %v3164_v51  ;;  %2762 = vmatprep.subr.mxu1 %v3164_v51 }
 0x1ea   : > { %2728 = vmatpush3.msra.mxu0 %v1231_v29  ;;  %2729 = vmatprep.mubr.msk.f32.mxu0 %vm3165_vm1, %v3164_v51 }
 0x1eb   : > { %2763 = vmatpush3.msra.mxu1 %v1215_v13  ;;  %2764 = vmatprep.mubr.msk.f32.mxu1 %vm3165_vm1, %v3164_v51  ;;  %v2343_v13 = vld [vmem:[#allocation5 + $0x210] ss:$0 sm:$0xff] }
 0x1ec   : > { %2730 = vmatmul.mubr.f32.vlgmr.msra.gmra.mxu0 %v1255_v1  ;;  %2765 = vmatmul.mubr.f32.vlgmr.msra.gmra.mxu1 %v1335_v30 }
 0x1ed   : > { %2767 = vmatprep.subr.mxu0 %v3164_v51  ;;  %2802 = vmatprep.subr.mxu1 %v3164_v51 }
 0x1ee   : > { %2768 = vmatpush3.msra.mxu0 %v1445_v31  ;;  %2803 = vmatpush3.msra.mxu1 %v1429_v32 }
 0x1ef   : > { %2769 = vmatprep.subr.mxu0 %v3164_v51  ;;  %2804 = vmatprep.subr.mxu1 %v3164_v51 }
 0x1f0   : > { %2770 = vmatpush3.msra.mxu0 %v1444_v33  ;;  %2805 = vmatpush3.msra.mxu1 %v1428_v34 }
 0x1f1   : > { %2771 = vmatprep.subr.mxu0 %v3164_v51  ;;  %2806 = vmatprep.subr.mxu1 %v3164_v51 }
 0x1f2   : > { %2772 = vmatpush3.msra.mxu0 %v1443_v35  ;;  %2807 = vmatpush3.msra.mxu1 %v1427_v36 }
 0x1f3   : > { %2773 = vmatprep.subr.mxu0 %v3164_v51  ;;  %2808 = vmatprep.subr.mxu1 %v3164_v51 }
 0x1f4   : > { %2774 = vmatpush3.msra.mxu0 %v1442_v37  ;;  %2809 = vmatpush3.msra.mxu1 %v1426_v39  ;;  %v2344_v39 = vld [vmem:[#allocation5 + $0x320] ss:$0 sm:$0xff] }
 0x1f5   : > { %2775 = vmatprep.subr.mxu0 %v3164_v51  ;;  %2810 = vmatprep.subr.mxu1 %v3164_v51 }
 0x1f6   : > { %2776 = vmatpush3.msra.mxu0 %v1441_v40  ;;  %2811 = vmatpush3.msra.mxu1 %v1425_v41 }
 0x1f7   : > { %2777 = vmatprep.subr.mxu0 %v3164_v51  ;;  %2812 = vmatprep.subr.mxu1 %v3164_v51 }
 0x1f8   : > { %2778 = vmatpush3.msra.mxu0 %v1440_v15  ;;  %2813 = vmatpush3.msra.mxu1 %v1424_v42 }
 0x1f9   : > { %2779 = vmatprep.subr.mxu0 %v3164_v51  ;;  %2814 = vmatprep.subr.mxu1 %v3164_v51 }
 0x1fa   : > { %2780 = vmatpush3.msra.mxu0 %v1439_v43  ;;  %2815 = vmatpush3.msra.mxu1 %v1423_v44  ;;  %v1938_v44 = vld [vmem:[#allocation5 + $0x508] sm:$0xff] }
 0x1fb   : > { %2781 = vmatprep.subr.mxu0 %v3164_v51  ;;  %2816 = vmatprep.subr.mxu1 %v3164_v51 }
 0x1fc   : > { %2782 = vmatpush3.msra.mxu0 %v1438_v45  ;;  %2817 = vmatpush3.msra.mxu1 %v1422_v38  ;;  %v1937_v45 = vld [vmem:[#allocation5 + $0x500] sm:$0xff]  ;;  %v1936_v38 = vld [vmem:[#allocation5 + $0x4f8] sm:$0xff] }
 0x1fd   : > { %2783 = vmatprep.subr.mxu0 %v3164_v51  ;;  %2818 = vmatprep.subr.mxu1 %v3164_v51 }
 0x1fe   : > { %2784 = vmatpush3.msra.mxu0 %v1437_v46  ;;  %2819 = vmatpush3.msra.mxu1 %v1421_v47  ;;  %v1935_v46 = vld [vmem:[#allocation5 + $0x4f0] sm:$0xff] }
 0x1ff   : > { %2785 = vmatprep.subr.mxu0 %v3164_v51  ;;  %2820 = vmatprep.subr.mxu1 %v3164_v51 }
 0x200   : > { %2786 = vmatpush3.msra.mxu0 %v1436_v49  ;;  %2821 = vmatpush3.msra.mxu1 %v1420_v50  ;;  %v2345_v50 = vld [vmem:[#allocation5 + $0x430] ss:$0 sm:$0xff] }
 0x201   : > { %2787 = vmatprep.subr.mxu0 %v3164_v51  ;;  %2822 = vmatprep.subr.mxu1 %v3164_v51 }
 0x202   : > { %2788 = vmatpush3.msra.mxu0 %v1435_v52  ;;  %2823 = vmatpush3.msra.mxu1 %v1419_v53 }
 0x203   : > { %2789 = vmatprep.subr.mxu0 %v3164_v51  ;;  %2824 = vmatprep.subr.mxu1 %v3164_v51 }
 0x204   : > { %2790 = vmatpush3.msra.mxu0 %v1434_v54  ;;  %2825 = vmatpush3.msra.mxu1 %v1418_v55 }
 0x205   : > { %2791 = vmatprep.subr.mxu0 %v3164_v51  ;;  %2826 = vmatprep.subr.mxu1 %v3164_v51 }
 0x206   : > { %2792 = vmatpush3.msra.mxu0 %v1433_v56  ;;  %2827 = vmatpush3.msra.mxu1 %v1417_v57  ;;  %v1934_v57 = vld [vmem:[#allocation5 + $0x4e8] sm:$0xff] }
 0x207   : > { %2793 = vmatprep.subr.mxu0 %v3164_v51  ;;  %2828 = vmatprep.subr.mxu1 %v3164_v51 }
 0x208   : > { %2794 = vmatpush3.msra.mxu0 %v1432_v58  ;;  %2829 = vmatpush3.msra.mxu1 %v1416_v59  ;;  %v1933_v58 = vld [vmem:[#allocation5 + $0x4e0] sm:$0xff]  ;;  %v1932_v59 = vld [vmem:[#allocation5 + $0x4d8] sm:$0xff] }
 0x209   : > { %2795 = vmatprep.subr.mxu0 %v3164_v51  ;;  %2830 = vmatprep.subr.mxu1 %v3164_v51 }
 0x20a   : > { %2796 = vmatpush3.msra.mxu0 %v1431_v63  ;;  %2831 = vmatpush3.msra.mxu1 %v1415_v0  ;;  %v1945_v63 = vld [vmem:[#allocation5 + $0x540] sm:$0xff]  ;;  %v1944_v0 = vld [vmem:[#allocation5 + $0x538] sm:$0xff] }
 0x20b   : > { %2797 = vmatprep.subr.mxu0 %v3164_v51  ;;  %2832 = vmatprep.subr.mxu1 %v3164_v51 }
 0x20c   : > { %2798 = vmatpush3.msra.mxu0 %v1430_v2  ;;  %2799 = vmatprep.mubr.msk.f32.mxu0 %vm3165_vm1, %v3164_v51  ;;  %v1943_v2 = vld [vmem:[#allocation5 + $0x530] sm:$0xff] }
 0x20d   : > { %2833 = vmatpush3.msra.mxu1 %v1414_v48  ;;  %2834 = vmatprep.mubr.msk.f32.mxu1 %vm3165_vm1, %v3164_v51  ;;  %v1940_v48 = vld [vmem:[#allocation5 + $0x518] sm:$0xff] }
 0x20e   : > { %2800 = vmatmul.mubr.f32.vlgmr.msra.gmra.mxu0 %v1454_v62  ;;  %2835 = vmatmul.mubr.f32.vlgmr.msra.gmra.mxu1 %v1534_v3  ;;  %v1942_v3 = vld [vmem:[#allocation5 + $0x528] sm:$0xff]  ;;  %v1941_v62 = vld [vmem:[#allocation5 + $0x520] sm:$0xff] }
 0x20f   : > { %2856 = vmatprep.subr.mxu1 %v3164_v51  ;;  %2872 = vmatprep.mubr.msk.f32.mxu1 %vm3165_vm1, %v3164_v51 }
 0x210   : > { %2857 = vmatpush3.msra.mxu1 %v3700_v12  ;;  %2837 = vmatprep.subr.mxu0 %v3164_v51 }
 0x211   : > { %2858 = vmatprep.subr.mxu1 %v3164_v51  ;;  %2838 = vmatpush3.msra.mxu0 %v3702_v4 }
 0x212   : > { %2859 = vmatpush3.msra.mxu1 %v1619_v5  ;;  %2839 = vmatprep.subr.mxu0 %v3164_v51 }
 0x213   : > { %2860 = vmatprep.subr.mxu1 %v3164_v51  ;;  %2840 = vmatpush3.msra.mxu0 %v3709_v6 }
 0x214   : > { %2861 = vmatpush3.msra.mxu1 %v1618_v7  ;;  %2841 = vmatprep.subr.mxu0 %v3164_v51 }
 0x215   : > { %2862 = vmatprep.subr.mxu1 %v3164_v51  ;;  %2842 = vmatpush3.msra.mxu0 %v3714_v8 }
 0x216   : > { %2863 = vmatpush3.msra.mxu1 %v1617_v9  ;;  %2843 = vmatprep.subr.mxu0 %v3164_v51 }
 0x217   : > { %2864 = vmatprep.subr.mxu1 %v3164_v51  ;;  %2844 = vmatpush3.msra.mxu0 %v3719_v10 }
 0x218   : > { %2865 = vmatpush3.msra.mxu1 %v1616_v11  ;;  %2845 = vmatprep.subr.mxu0 %v3164_v51 }
 0x219   : > { %2866 = vmatprep.subr.mxu1 %v3164_v51  ;;  %2846 = vmatpush3.msra.mxu0 %v3724_v14 }
 0x21a   : > { %2867 = vmatpush3.msra.mxu1 %v1615_v16  ;;  %2847 = vmatprep.subr.mxu0 %v3164_v51 }
 0x21b   : > { %2868 = vmatprep.subr.mxu1 %v3164_v51  ;;  %2848 = vmatpush3.msra.mxu0 %v3729_v17 }
 0x21c   : > { %2869 = vmatpush3.msra.mxu1 %v1614_v18  ;;  %2849 = vmatprep.subr.mxu0 %v3164_v51 }
 0x21d   : > { %2870 = vmatprep.subr.mxu1 %v3164_v51  ;;  %2850 = vmatpush3.msra.mxu0 %v3734_v19 }
 0x21e   : > { %2871 = vmatpush3.msra.mxu1 %v1613_v20  ;;  %2851 = vmatprep.subr.mxu0 %v3164_v51 }
 0x21f   : > { %2852 = vmatpush3.msra.mxu0 %v1621_v21  ;;  %2853 = vmatprep.mubr.msk.f32.mxu0 %vm3165_vm1, %v3164_v51 }
 0x220   : > { %2894 = vmatprep.subr.mxu1 %v3164_v51  ;;  %2875 = vmatprep.subr.mxu0 %v3164_v51 }
 0x268   : > { %v955_v22 = vpop.f32.mrf.mxu0  ;;  %v1025_v23 = vpop.f32.mrf.mxu1 }
 0x269   : > { %v1026_v25 = vadd.f32 %v1025_v23, %v955_v22  ;;  %v2103_v22 = vld [vmem:[#allocation5 + $0x578] sm:$0xff]  ;;  %v2102_v23 = vld [vmem:[#allocation5 + $0x570] sm:$0xff] }
 0x26a   : > { %v2591_v26 = vpop.f32.mrf.mxu0  ;;  %v2626_v27 = vpop.f32.mrf.mxu1 }
 0x26b   : > { %v1034_v28 = vadd.f32 %v2342_v24, %v1026_v25  ;;  %v2101_v24 = vld [vmem:[#allocation5 + $0x568] sm:$0xff]  ;;  %v2100_v25 = vld [vmem:[#allocation5 + $0x560] sm:$0xff] }
 0x26d   : > { %v1035_v29 = vmax.f32 %v1034_v28, 0.0 }
 0x26f   : > { %2873 = vmatmul.mubr.msk.f32.vlgmr.msra.gmra.mxu1 %vm1629_vm2, %v1035_v29  ;;  %v2353_v29 = vld [vmem:[#allocation5 + $0x550] ss:$0 sm:$0xff] }
 0x270   : > { %2895 = vmatpush3.msra.mxu1 %v3700_v12  ;;  %2910 = vmatprep.mubr.msk.f32.mxu1 %vm3165_vm1, %v3164_v51  ;;  %v1939_v12 = vld [vmem:[#allocation5 + $0x510] sm:$0xff] }
 0x271   : > { %2896 = vmatprep.subr.mxu1 %v3164_v51 }
 0x272   : > { %2897 = vmatpush3.msra.mxu1 %v1619_v5 }
 0x273   : > { %2898 = vmatprep.subr.mxu1 %v3164_v51 }
 0x274   : > { %2899 = vmatpush3.msra.mxu1 %v1618_v7  ;;  %v2348_v7 = vld [vmem:[#allocation5 + $0x4c0] ss:$0 sm:$0xff] }
 0x275   : > { %2900 = vmatprep.subr.mxu1 %v3164_v51 }
 0x276   : > { %2901 = vmatpush3.msra.mxu1 %v1617_v9 }
 0x277   : > { %2902 = vmatprep.subr.mxu1 %v3164_v51 }
 0x278   : > { %2903 = vmatpush3.msra.mxu1 %v1616_v11 }
 0x279   : > { %2904 = vmatprep.subr.mxu1 %v3164_v51 }
 0x27a   : > { %2905 = vmatpush3.msra.mxu1 %v1615_v16 }
 0x27b   : > { %2906 = vmatprep.subr.mxu1 %v3164_v51 }
 0x27c   : > { %2907 = vmatpush3.msra.mxu1 %v1614_v18 }
 0x27d   : > { %2908 = vmatprep.subr.mxu1 %v3164_v51 }
 0x27e   : > { %2909 = vmatpush3.msra.mxu1 %v1613_v20 }
 0x27f   : > { %2932 = vmatprep.subr.mxu1 %v3164_v51 }
 0x28a   : > { %v1134_v30 = vpop.f32.mrf.mxu0  ;;  %v1204_v1 = vpop.f32.mrf.mxu1 }
 0x28b   : > { %v1205_v31 = vadd.f32 %v1204_v1, %v1134_v30 }
 0x28c   : > { %v2661_v32 = vpop.f32.mrf.mxu0  ;;  %v2696_v33 = vpop.f32.mrf.mxu1 }
 0x28d   : > { %v1213_v34 = vadd.f32 %v2343_v13, %v1205_v31  ;;  %v2354_v32 = vld [vmem:[#allocation5 + $0x580] ss:$0 sm:$0xff] }
 0x28f   : > { %v1214_v35 = vmax.f32 %v1213_v34, 0.0 }
 0x291   : > { %2854 = vmatmul.mubr.msk.f32.vlgmr.msra.gmra.mxu0 %vm1629_vm2, %v1214_v35 }
 0x292   : > { %2876 = vmatpush3.msra.mxu0 %v3702_v4  ;;  %2891 = vmatprep.mubr.msk.f32.mxu0 %vm3165_vm1, %v3164_v51 }
 0x293   : > { %2877 = vmatprep.subr.mxu0 %v3164_v51 }
 0x294   : > { %2878 = vmatpush3.msra.mxu0 %v3709_v6 }
 0x295   : > { %2879 = vmatprep.subr.mxu0 %v3164_v51 }
 0x296   : > { %2880 = vmatpush3.msra.mxu0 %v3714_v8 }
 0x297   : > { %2881 = vmatprep.subr.mxu0 %v3164_v51 }
 0x298   : > { %2882 = vmatpush3.msra.mxu0 %v3719_v10 }
 0x299   : > { %2883 = vmatprep.subr.mxu0 %v3164_v51 }
 0x29a   : > { %2884 = vmatpush3.msra.mxu0 %v3724_v14 }
 0x29b   : > { %2885 = vmatprep.subr.mxu0 %v3164_v51 }
 0x29c   : > { %2886 = vmatpush3.msra.mxu0 %v3729_v17 }
 0x29d   : > { %2887 = vmatprep.subr.mxu0 %v3164_v51 }
 0x29e   : > { %2888 = vmatpush3.msra.mxu0 %v3734_v19 }
 0x29f   : > { %2889 = vmatprep.subr.mxu0 %v3164_v51 }
 0x2a0   : > { %2890 = vmatpush3.msra.mxu0 %v1621_v21 }
 0x2a1   : > { %2913 = vmatprep.subr.mxu0 %v3164_v51 }
 0x2ac   : > { %v1323_v36 = vpop.f32.mrf.mxu0  ;;  %v1403_v37 = vpop.f32.mrf.mxu1 }
 0x2ad   : > { %v1404_v40 = vadd.f32 %v1403_v37, %v1323_v36 }
 0x2ae   : > { %v2731_v41 = vpop.f32.mrf.mxu0  ;;  %v2766_v15 = vpop.f32.mrf.mxu1 }
 0x2af   : > { %v1412_v42 = vadd.f32 %v2344_v39, %v1404_v40 }
 0x2b1   : > { %v1413_v43 = vmax.f32 %v1412_v42, 0.0 }
 0x2b3   : > { %2911 = vmatmul.mubr.msk.f32.vlgmr.msra.gmra.mxu1 %vm1629_vm2, %v1413_v43 }
 0x2b4   : > { %2933 = vmatpush3.msra.mxu1 %v1938_v44  ;;  %2948 = vmatprep.mubr.msk.f32.mxu1 %vm3165_vm1, %v3164_v51 }
 0x2b5   : > { %2934 = vmatprep.subr.mxu1 %v3164_v51 }
 0x2b6   : > { %2935 = vmatpush3.msra.mxu1 %v1937_v45 }
 0x2b7   : > { %2936 = vmatprep.subr.mxu1 %v3164_v51 }
 0x2b8   : > { %2937 = vmatpush3.msra.mxu1 %v1936_v38 }
 0x2b9   : > { %2938 = vmatprep.subr.mxu1 %v3164_v51 }
 0x2ba   : > { %2939 = vmatpush3.msra.mxu1 %v1935_v46 }
 0x2bb   : > { %2940 = vmatprep.subr.mxu1 %v3164_v51 }
 0x2bc   : > { %2941 = vmatpush3.msra.mxu1 %v1934_v57 }
 0x2bd   : > { %2942 = vmatprep.subr.mxu1 %v3164_v51 }
 0x2be   : > { %2943 = vmatpush3.msra.mxu1 %v1933_v58 }
 0x2bf   : > { %2944 = vmatprep.subr.mxu1 %v3164_v51 }
 0x2c0   : > { %2945 = vmatpush3.msra.mxu1 %v1932_v59 }
 0x2c1   : > { %2946 = vmatprep.subr.mxu1 %v3164_v51 }
 0x2c2   : > { %2947 = vmatpush3.msra.mxu1 %v1931_v60 }
 0x2ce   : > { %v1522_v47 = vpop.f32.mrf.mxu0  ;;  %v1602_v49 = vpop.f32.mrf.mxu1 }
 0x2cf   : > { %v1603_v52 = vadd.f32 %v1602_v49, %v1522_v47 }
 0x2d0   : > { %v2801_v53 = vpop.f32.mrf.mxu0  ;;  %v2836_v54 = vpop.f32.mrf.mxu1 }
 0x2d1   : > { %v1611_v55 = vadd.f32 %v2345_v50, %v1603_v52 }
 0x2d3   : > { %v1612_v56 = vmax.f32 %v1611_v55, 0.0 }
 0x2d5   : > { %2892 = vmatmul.mubr.msk.f32.vlgmr.msra.gmra.mxu0 %vm1629_vm2, %v1612_v56 }
 0x2d6   : > { %2929 = vmatprep.mubr.msk.f32.mxu0 %vm3165_vm1, %v3164_v51  ;;  %2914 = vmatpush3.msra.mxu0 %v1946_v61 }
 0x2d7   : > { %2915 = vmatprep.subr.mxu0 %v3164_v51 }
 0x2d8   : > { %2916 = vmatpush3.msra.mxu0 %v1945_v63 }
 0x2d9   : > { %2917 = vmatprep.subr.mxu0 %v3164_v51 }
 0x2da   : > { %2918 = vmatpush3.msra.mxu0 %v1944_v0 }
 0x2db   : > { %2919 = vmatprep.subr.mxu0 %v3164_v51 }
 0x2dc   : > { %2920 = vmatpush3.msra.mxu0 %v1943_v2 }
 0x2dd   : > { %2921 = vmatprep.subr.mxu0 %v3164_v51 }
 0x2de   : > { %2922 = vmatpush3.msra.mxu0 %v1942_v3 }
 0x2df   : > { %2923 = vmatprep.subr.mxu0 %v3164_v51 }
 0x2e0   : > { %2924 = vmatpush3.msra.mxu0 %v1941_v62 }
 0x2e1   : > { %2925 = vmatprep.subr.mxu0 %v3164_v51 }
 0x2e2   : > { %2926 = vmatpush3.msra.mxu0 %v1940_v48 }
 0x2e3   : > { %2927 = vmatprep.subr.mxu0 %v3164_v51 }
 0x2e4   : > { %2928 = vmatpush3.msra.mxu0 %v1939_v12 }
 0x2e5   : > { %2951 = vmatprep.subr.mxu0 %v3164_v51 }
 0x32f   : > { %v1772_v4 = vpop.f32.mrf.mxu1 }
 0x331   : > { %v2874_v5 = vpop.f32.mrf.mxu1 }
 0x351   : > { %v1699_v6 = vpop.f32.mrf.mxu0 }
 0x352   : > { %v1773_v8 = vadd.f32 %v1772_v4, %v1699_v6 }
 0x353   : > { %v2855_v9 = vpop.f32.mrf.mxu0 }
 0x354   : > { %v1781_v10 = vadd.f32 %v2348_v7, %v1773_v8 }
 0x356   : > { %v1782_v11 = vmax.f32 %v1781_v10, 0.0 }
 0x358   : > { %2949 = vmatmul.mubr.msk.f32.vlgmr.msra.gmra.mxu1 %vm1629_vm2, %v1782_v11 }
 0x373   : > { %v1925_v14 = vpop.f32.mrf.mxu1 }
 0x375   : > { %v2912_v16 = vpop.f32.mrf.mxu1 }
 0x395   : > { %v1852_v17 = vpop.f32.mrf.mxu0 }
 0x396   : > { %v1926_v18 = vadd.f32 %v1925_v14, %v1852_v17 }
 0x397   : > { %v2893_v19 = vpop.f32.mrf.mxu0 }
 0x398   : > { %v1929_v20 = vadd.f32 %v2348_v7, %v1926_v18 }
 0x39a   : > { %v1930_v21 = vmax.f32 %v1929_v20, 0.0 }
 0x39c   : > { %2930 = vmatmul.mubr.msk.f32.vlgmr.msra.gmra.mxu0 %vm1629_vm2, %v1930_v21 }
 0x39d   : > { %2959 = vmatprep.mubr.msk.f32.mxu0 %vm3165_vm1, %v3164_v51  ;;  %2952 = vmatpush3.msra.mxu0 %v2103_v22 }
 0x39e   : > { %2953 = vmatprep.subr.mxu0 %v3164_v51 }
 0x39f   : > { %2954 = vmatpush3.msra.mxu0 %v2102_v23 }
 0x3a0   : > { %2955 = vmatprep.subr.mxu0 %v3164_v51 }
 0x3a1   : > { %2956 = vmatpush3.msra.mxu0 %v2101_v24 }
 0x3a2   : > { %2957 = vmatprep.subr.mxu0 %v3164_v51 }
 0x3a3   : > { %2958 = vmatpush3.msra.mxu0 %v2100_v25 }
 0x418   : > { %v2089_v26 = vpop.f32.mrf.mxu1 }
 0x41a   : > { %v2950_v27 = vpop.f32.mrf.mxu1 }
 0x45c   : > { %v2016_v28 = vpop.f32.mrf.mxu0 }
 0x45d   : > { %v2090_v30 = vadd.f32 %v2089_v26, %v2016_v28 }
 0x45e   : > { %v2931_v1 = vpop.f32.mrf.mxu0 }
 0x45f   : > { %v2098_v13 = vadd.f32 %v2353_v29, %v2090_v30 }
 0x461   : > { %v2099_v31 = vmax.f32 %v2098_v13, 0.0 }
 0x463   : > { %2960 = vmatmul.mubr.msk.f32.vlgmr.msra.gmra.mxu0 %vm2109_vm3, %v2099_v31 }
 0x523   : > { %v2179_v33 = vpop.f32.mrf.mxu0 }
 0x524   : > { %v2180_v34 = vadd.f32 %v2354_v32, %v2179_v33 }
 0x525   : > { %v2961_v35 = vpop.f32.mrf.mxu0 }
 0x526   : > { %v2356_v36 = vmul.f32 -1.442695, %v2180_v34 }
 0x528   : > { %3042 = vpow2.f32 %v2356_v36 }
 0x535   : > { %v3043_v37 = vpop.eup %3042 }
 0x536   : > { %v2186_v51 = vadd.f32 1.0, %v3043_v37 }
 0x538   : > { %3044 = vrcp.f32 %v2186_v51 }
 0x545   : > { %v3045_v39 = vpop.eup %3044 }
 0x546   : > { %2190 = vst.msk [vmem:[%s3828_s3] sm:$0x3] %vm2189_vm4, %v3045_v39 }
 0x547 PF: > { %s19_s20 = sadd.s32 1, %s3154_s20   ;;  %s3835_s15 = smov %s3138_s16 }
 0x548   : > { %p16_p5 = scmp.ge.s32.totalorder %s19_s20, 6   ;;  %s3836_s16 = smov %s3142_s17 }
 0x549   : > { %s3837_s17 = smov %s3268_s13  ;;  %s3838_s18 = smov %s3150_s19 }
 0x54a   : > { %s3839_s19 = smov %s3841_s28  ;;  %18 = sbr.rel (!%p16_p5) target bundleno = 5 (0x5), region = 100 }
 0x54f   :  { %2230 = vsyncpa [#allocation4], 1 }
 0x550   :  { %2232 = vsyncpa [#allocation4 + $0x1], 1 }
 0x551   :  { %2233 = vsyncpa [#allocation6], 1 }

</bundles_post_ra>
